<compile_context>
chip_gen: v5e
topology: v5e:2x2
jax: 0.10.0
libtpu: 0.0.40
codegen_flags: <defaults>
</compile_context>

<pallas_src>
import functools
import math

import numpy as np

import jax
import jax.numpy as jnp
from jax.experimental import pallas as pl
from jax.experimental.pallas import tpu as pltpu


def _round_up(x, m):
    return (x + m - 1) // m * m


def _crn_kernel(x_ref, rm_ref, wc_ref, bc_ref, g_ref, b_ref, lv_ref, wp_ref,
                bp_ref, o_ref, h_ref, *, n_layers, k_size, tp_len, n_bt,
                c_hidden, eps):
    pad = (k_size - 1) // 2
    m_rows = n_bt * tp_len - (k_size - 1)       # conv-output rows (all batches)
    inv_c = 1.0 / float(c_hidden)
    bf16 = jnp.bfloat16

    lane_valid = lv_ref[...]                     # (1, Cp): 1.0 on real channels
    rm = rm_ref[pl.ds(pad, m_rows), :]           # (M, 1): seq & pad/boundary mask

    # Layer-0 conv input: x * x_mask; conv-padding rows are zero (rm == 0 there).
    # Scratch is bf16 — it only ever feeds the bf16 MXU operands.
    h_ref[...] = (x_ref[...] * rm_ref[...]).astype(bf16)

    y = None
    for layer in range(n_layers):
        # ---- Conv1d as a single long-K MXU matmul (bf16 x bf16 -> f32 acc). ----
        xk = jnp.concatenate(
            [h_ref[pl.ds(k, m_rows), :] for k in range(k_size)], axis=1)
        acc = jnp.dot(xk, wc_ref[layer],
                      preferred_element_type=jnp.float32)          # (M, Cp)
        acc = acc + bc_ref[layer]

        # ---- LayerNorm over channels (lanes), two-pass variance, f32. ----
        mean = jnp.sum(acc, axis=-1, keepdims=True) * inv_c
        d = (acc - mean) * lane_valid
        var = jnp.sum(d * d, axis=-1, keepdims=True) * inv_c
        y = d * jax.lax.rsqrt(var + eps) * g_ref[layer] + b_ref[layer]

        # ---- ReLU. ----
        # TODO(synk): Dropout(p_dropout) omitted — identity at inference/eval.
        y = jnp.maximum(y, 0.0)

        if layer + 1 < n_layers:
            # Masked write-back == masking the next conv's input; also zeroes
            # rows landing in conv-padding / batch-boundary positions.
            h_ref[pl.ds(pad, m_rows), :] = (y * rm).astype(bf16)

    # ---- 1x1 projection + residual + final mask. ----
    proj = jnp.dot(y.astype(bf16), wp_ref[...],
                   preferred_element_type=jnp.float32) + bp_ref[...]
    out = (x_ref[pl.ds(pad, m_rows), :] + proj) * rm
    # Single aligned, lane-dense store (output keeps the padded slab layout);
    # zero-fill the K-1 tail rows so the whole block is deterministic.
    o_ref[pl.ds(0, m_rows), :] = out.astype(o_ref.dtype)
    if k_size > 1:
        o_ref[pl.ds(m_rows, k_size - 1), :] = jnp.zeros(
            (k_size - 1, o_ref.shape[1]), o_ref.dtype)


def conv_relu_norm_forward(x, x_mask, conv_w, conv_b, ln_gamma, ln_beta,
                           proj_w, proj_b, *, eps=1e-4, batch_tile=None):
    """x: (B, C_in, T); x_mask: (B, 1, T); conv_w[l]: (C_h, C_in_l, K)."""
    B, c_in, T = x.shape
    n_layers = len(conv_w)
    c_hid, _, K = conv_w[0].shape
    c_out = proj_w.shape[0]
    assert K % 2 == 1, "ConvReluNorm uses 'same' padding => odd kernel_size"
    P = (K - 1) // 2
    Tp = _round_up(T + K - 1, 8)                     # conv pad + sublane align
    Cp = _round_up(max(c_in, c_hid, c_out), 128)     # lane-dense channel pad
    bt = batch_tile if batch_tile is not None else B
    assert B % bt == 0

    f32, bf16 = jnp.float32, jnp.bfloat16

    # ---- layout plumbing: flat (B*Tp, Cp) time/channel-padded slabs ----------
    xt = jnp.transpose(x, (0, 2, 1)).astype(f32)                     # (B, T, Cin)
    xt = jnp.pad(xt, ((0, 0), (P, Tp - T - P), (0, Cp - c_in)))      # (B, Tp, Cp)
    x_flat = xt.reshape(B * Tp, Cp)

    m = x_mask[:, 0, :].astype(f32)                                  # (B, T)
    m = jnp.pad(m, ((0, 0), (P, Tp - T - P)))                        # (B, Tp)
    rowmask = m.reshape(B * Tp, 1)

    # Conv weights -> (n_layers, K*Cp, Cp), row index = k*Cp + c_in, col = c_out.
    w_stack = []
    for w_l in conv_w:
        co_l, ci_l, _ = w_l.shape
        wt = jnp.transpose(w_l, (2, 1, 0)).astype(f32)               # (K, Ci, Co)
        wt = jnp.pad(wt, ((0, 0), (0, Cp - ci_l), (0, Cp - co_l)))
        w_stack.append(wt.reshape(K * Cp, Cp))
    w_conv = jnp.stack(w_stack).astype(bf16)                         # (L, K*Cp, Cp)

    b_conv = jnp.stack([jnp.pad(b.astype(f32), (0, Cp - c_hid))
                        for b in conv_b])[:, None, :]                # (L, 1, Cp)
    g_stack = jnp.stack([jnp.pad(g.astype(f32), (0, Cp - c_hid))
                         for g in ln_gamma])[:, None, :]
    be_stack = jnp.stack([jnp.pad(bb.astype(f32), (0, Cp - c_hid))
                          for bb in ln_beta])[:, None, :]
    lane_valid = (jnp.arange(Cp) < c_hid).astype(f32)[None, :]       # (1, Cp)

    wp = jnp.transpose(proj_w[:, :, 0], (1, 0)).astype(f32)          # (Ch, Cout)
    wp = jnp.pad(wp, ((0, Cp - c_hid), (0, Cp - c_out))).astype(bf16)
    bp = jnp.pad(proj_b.astype(f32), (0, Cp - c_out))[None, :]       # (1, Cp)
    # --------------------------------------------------------------------------

    flops = 2 * B * T * (sum(K * w.shape[1] * w.shape[0] for w in conv_w)
                         + c_hid * c_out)
    bytes_accessed = (x_flat.size * 4 + rowmask.size * 4 + w_conv.size * 2
                      + b_conv.size * 4 + g_stack.size * 4 + be_stack.size * 4
                      + lane_valid.size * 4 + wp.size * 2 + bp.size * 4
                      + B * Tp * Cp * 4)

    kernel = functools.partial(
        _crn_kernel, n_layers=n_layers, k_size=K, tp_len=Tp, n_bt=bt,
        c_hidden=c_hid, eps=eps)

    out_flat = pl.pallas_call(
        kernel,
        out_shape=jax.ShapeDtypeStruct((B * Tp, Cp), f32),
        grid=(B // bt,),
        in_specs=[
            pl.BlockSpec((bt * Tp, Cp), lambda i: (i, 0)),            # x slab
            pl.BlockSpec((bt * Tp, 1), lambda i: (i, 0)),             # row mask
            pl.BlockSpec((n_layers, K * Cp, Cp), lambda i: (0, 0, 0)),  # conv W
            pl.BlockSpec((n_layers, 1, Cp), lambda i: (0, 0, 0)),     # conv bias
            pl.BlockSpec((n_layers, 1, Cp), lambda i: (0, 0, 0)),     # ln gamma
            pl.BlockSpec((n_layers, 1, Cp), lambda i: (0, 0, 0)),     # ln beta
            pl.BlockSpec((1, Cp), lambda i: (0, 0)),                  # lane mask
            pl.BlockSpec((Cp, Cp), lambda i: (0, 0)),                 # proj W
            pl.BlockSpec((1, Cp), lambda i: (0, 0)),                  # proj bias
        ],
        out_specs=pl.BlockSpec((bt * Tp, Cp), lambda i: (i, 0)),
        scratch_shapes=[pltpu.VMEM((bt * Tp, Cp), jnp.bfloat16)],
        compiler_params=pltpu.CompilerParams(
            dimension_semantics=("parallel",)),
        cost_estimate=pl.CostEstimate(flops=flops,
                                      transcendentals=B * T * n_layers,
                                      bytes_accessed=bytes_accessed),
    )(x_flat, rowmask, w_conv, b_conv, g_stack, be_stack, lane_valid, wp, bp)

    out = out_flat.reshape(B, Tp, Cp)[:, :T, :c_out]
    return jnp.transpose(out, (0, 2, 1))                             # (B, Cout, T)


def conv_relu_norm_reference(x, x_mask, conv_w, conv_b, ln_gamma, ln_beta,
                             proj_w, proj_b, *, eps=1e-4):
    """Pure-JAX reference matching the PyTorch module (eval mode)."""
    def conv1d(h, w, b):
        K = w.shape[2]
        P = (K - 1) // 2
        T = h.shape[2]
        hp = jnp.pad(h, ((0, 0), (0, 0), (P, P)))
        y = sum(jnp.einsum("bct,oc->bot", hp[:, :, k:k + T], w[:, :, k],
                           precision=jax.lax.Precision.HIGHEST)
                for k in range(K))
        return y + b[None, :, None]

    x_org = x
    h = x
    for l in range(len(conv_w)):
        y = conv1d(h * x_mask, conv_w[l], conv_b[l])
        mean = jnp.mean(y, axis=1, keepdims=True)
        var = jnp.mean((y - mean) ** 2, axis=1, keepdims=True)
        y = (y - mean) * jax.lax.rsqrt(var + eps)
        y = y * ln_gamma[l][None, :, None] + ln_beta[l][None, :, None]
        h = jnp.maximum(y, 0.0)
    proj = jnp.einsum("bct,oc->bot", h, proj_w[:, :, 0],
                      precision=jax.lax.Precision.HIGHEST) + proj_b[None, :, None]
    return (x_org + proj) * x_mask


if __name__ == "__main__":
    B, C_IN, C_HID, C_OUT, T, K, L = 4, 64, 96, 64, 24, 5, 3
    EPS = 1e-4

    key = jax.random.PRNGKey(0)
    keys = jax.random.split(key, 16)

    x = jax.random.normal(keys[0], (B, C_IN, T), jnp.float32)
    lengths = jnp.array([T, 17, 24, 9])
    x_mask = (jnp.arange(T)[None, None, :]
              < lengths[:, None, None]).astype(jnp.float32)          # (B, 1, T)

    conv_w, conv_b, ln_g, ln_b = [], [], [], []
    for l in range(L):
        cin_l = C_IN if l == 0 else C_HID
        bound = 1.0 / math.sqrt(cin_l * K)
        conv_w.append(jax.random.uniform(keys[1 + l], (C_HID, cin_l, K),
                                         jnp.float32, -bound, bound))
        conv_b.append(jax.random.uniform(keys[4 + l], (C_HID,), jnp.float32,
                                         -bound, bound))
        ln_g.append(1.0 + 0.1 * jax.random.normal(keys[7 + l], (C_HID,),
                                                  jnp.float32))
        ln_b.append(0.1 * jax.random.normal(keys[10 + l], (C_HID,), jnp.float32))

    # The module zero-inits proj; use small random weights so the path is tested.
    pbound = 1.0 / math.sqrt(C_HID)
    proj_w = jax.random.uniform(keys[13], (C_OUT, C_HID, 1), jnp.float32,
                                -pbound, pbound)
    proj_b = jax.random.uniform(keys[14], (C_OUT,), jnp.float32, -pbound, pbound)

    fwd = jax.jit(functools.partial(conv_relu_norm_forward, eps=EPS,
                                    batch_tile=2))
    out = jax.block_until_ready(fwd(x, x_mask, conv_w, conv_b, ln_g, ln_b,
                                    proj_w, proj_b))

    ref = conv_relu_norm_reference(x, x_mask, conv_w, conv_b, ln_g, ln_b,
                                   proj_w, proj_b, eps=EPS)
    np.testing.assert_allclose(np.asarray(out), np.asarray(ref),
                               rtol=2e-2, atol=2e-2)
    print("KERNEL_OK")
</pallas_src>

<mosaic_0001>
module attributes {stable_mosaic.version = 11 : i64} {
  func.func @_crn_kernel(%arg0: i32, %arg1: memref<64x128xf32, #tpu.memory_space<vmem>>, %arg2: memref<64x1xf32, #tpu.memory_space<vmem>>, %arg3: memref<3x640x128xbf16, #tpu.memory_space<vmem>>, %arg4: memref<3x1x128xf32, #tpu.memory_space<vmem>>, %arg5: memref<3x1x128xf32, #tpu.memory_space<vmem>>, %arg6: memref<3x1x128xf32, #tpu.memory_space<vmem>>, %arg7: memref<1x128xf32, #tpu.memory_space<vmem>>, %arg8: memref<128x128xbf16, #tpu.memory_space<vmem>>, %arg9: memref<1x128xf32, #tpu.memory_space<vmem>>, %arg10: memref<64x128xf32, #tpu.memory_space<vmem>>, %arg11: memref<64x128xbf16, #tpu.memory_space<vmem>>) attributes {dimension_semantics = [#tpu.dimension_semantics<parallel>], iteration_bounds = array<i64: 2>, scalar_prefetch = 0 : i64, scratch_operands = 1 : i64, tpu.core_type = #tpu.core_type<tc>, window_params = [{transform_indices = @transform_0, window_bounds = array<i64: 64, 128>}, {transform_indices = @transform_1, window_bounds = array<i64: 64, 1>}, {pipeline_mode = #tpu.pipeline_mode<synchronous>, transform_indices = @transform_2, window_bounds = array<i64: 3, 640, 128>}, {pipeline_mode = #tpu.pipeline_mode<synchronous>, transform_indices = @transform_3, window_bounds = array<i64: 3, 1, 128>}, {pipeline_mode = #tpu.pipeline_mode<synchronous>, transform_indices = @transform_4, window_bounds = array<i64: 3, 1, 128>}, {pipeline_mode = #tpu.pipeline_mode<synchronous>, transform_indices = @transform_5, window_bounds = array<i64: 3, 1, 128>}, {pipeline_mode = #tpu.pipeline_mode<synchronous>, transform_indices = @transform_6, window_bounds = array<i64: 1, 128>}, {pipeline_mode = #tpu.pipeline_mode<synchronous>, transform_indices = @transform_7, window_bounds = array<i64: 128, 128>}, {pipeline_mode = #tpu.pipeline_mode<synchronous>, transform_indices = @transform_8, window_bounds = array<i64: 1, 128>}, {transform_indices = @transform_9, window_bounds = array<i64: 64, 128>}]} {
    %c0 = arith.constant 0 : index
    %c0_0 = arith.constant 0 : index
    %0 = vector.load %arg7[%c0, %c0_0] : memref<1x128xf32, #tpu.memory_space<vmem>>, vector<1x128xf32>
    %c2 = arith.constant 2 : index
    %c0_1 = arith.constant 0 : index
    %1 = vector.load %arg2[%c2, %c0_1] : memref<64x1xf32, #tpu.memory_space<vmem>>, vector<60x1xf32>
    %c0_2 = arith.constant 0 : index
    %c0_3 = arith.constant 0 : index
    %2 = vector.load %arg1[%c0_2, %c0_3] : memref<64x128xf32, #tpu.memory_space<vmem>>, vector<64x128xf32>
    %c0_4 = arith.constant 0 : index
    %c0_5 = arith.constant 0 : index
    %3 = vector.load %arg2[%c0_4, %c0_5] : memref<64x1xf32, #tpu.memory_space<vmem>>, vector<64x1xf32>
    %4 = vector.broadcast %3 : vector<64x1xf32> to vector<64x128xf32>
    %5 = arith.mulf %2, %4 : vector<64x128xf32>
    %6 = arith.truncf %5 : vector<64x128xf32> to vector<64x128xbf16>
    %c0_6 = arith.constant 0 : index
    %c0_7 = arith.constant 0 : index
    %7 = vector.load %arg11[%c0_6, %c0_7] : memref<64x128xbf16, #tpu.memory_space<vmem>>, vector<64x128xbf16>
    tpu.vector_store %arg11[%c0_6, %c0_7], %6 {strides = array<i32>} : memref<64x128xbf16, #tpu.memory_space<vmem>>, vector<64x128xbf16>,
    %c0_8 = arith.constant 0 : index
    %c0_9 = arith.constant 0 : index
    %8 = vector.load %arg11[%c0_8, %c0_9] : memref<64x128xbf16, #tpu.memory_space<vmem>>, vector<60x128xbf16>
    %c1 = arith.constant 1 : index
    %c0_10 = arith.constant 0 : index
    %9 = vector.load %arg11[%c1, %c0_10] : memref<64x128xbf16, #tpu.memory_space<vmem>>, vector<60x128xbf16>
    %c2_11 = arith.constant 2 : index
    %c0_12 = arith.constant 0 : index
    %10 = vector.load %arg11[%c2_11, %c0_12] : memref<64x128xbf16, #tpu.memory_space<vmem>>, vector<60x128xbf16>
    %c3 = arith.constant 3 : index
    %c0_13 = arith.constant 0 : index
    %11 = vector.load %arg11[%c3, %c0_13] : memref<64x128xbf16, #tpu.memory_space<vmem>>, vector<60x128xbf16>
    %c4 = arith.constant 4 : index
    %c0_14 = arith.constant 0 : index
    %12 = vector.load %arg11[%c4, %c0_14] : memref<64x128xbf16, #tpu.memory_space<vmem>>, vector<60x128xbf16>
    %13 = tpu.concatenate %8, %9, %10, %11, %12 in 1 : vector<60x128xbf16>, vector<60x128xbf16>, vector<60x128xbf16>, vector<60x128xbf16>, vector<60x128xbf16> -> vector<60x640xbf16>
    %c0_15 = arith.constant 0 : index
    %c0_16 = arith.constant 0 : index
    %c0_17 = arith.constant 0 : index
    %14 = vector.load %arg3[%c0_15, %c0_16, %c0_17] : memref<3x640x128xbf16, #tpu.memory_space<vmem>>, vector<1x640x128xbf16>
    %15 = vector.shape_cast %14 : vector<1x640x128xbf16> to vector<640x128xbf16>
    %cst = arith.constant dense<0.000000e+00> : vector<60x128xf32>
    %16 = tpu.matmul %13, %15, %cst {dimension_numbers = #tpu.dot_dimension_numbers<[1], [0], [0], [1], [0, 0, 1, 1], [], []>} : vector<60x640xbf16>, vector<640x128xbf16>, vector<60x128xf32> -> vector<60x128xf32>
    %c0_18 = arith.constant 0 : index
    %c0_19 = arith.constant 0 : index
    %c0_20 = arith.constant 0 : index
    %17 = vector.load %arg4[%c0_18, %c0_19, %c0_20] : memref<3x1x128xf32, #tpu.memory_space<vmem>>, vector<1x1x128xf32>
    %18 = vector.shape_cast %17 : vector<1x1x128xf32> to vector<1x128xf32>
    %19 = vector.broadcast %18 : vector<1x128xf32> to vector<60x128xf32>
    %20 = arith.addf %16, %19 : vector<60x128xf32>
    %cst_21 = arith.constant dense<0.000000e+00> : vector<60xf32>
    %21 = vector.multi_reduction <add>, %20, %cst_21 [1] : vector<60x128xf32> to vector<60xf32>
    %22 = vector.shape_cast %21 : vector<60xf32> to vector<60x1xf32>
    %cst_22 = arith.constant 0.010416667 : f32
    %23 = vector.broadcast %cst_22 : f32 to vector<60x1xf32>
    %24 = arith.mulf %22, %23 : vector<60x1xf32>
    %25 = vector.broadcast %24 : vector<60x1xf32> to vector<60x128xf32>
    %26 = arith.subf %20, %25 : vector<60x128xf32>
    %27 = vector.broadcast %0 : vector<1x128xf32> to vector<60x128xf32>
    %28 = arith.mulf %26, %27 : vector<60x128xf32>
    %29 = arith.mulf %28, %28 : vector<60x128xf32>
    %cst_23 = arith.constant dense<0.000000e+00> : vector<60xf32>
    %30 = vector.multi_reduction <add>, %29, %cst_23 [1] : vector<60x128xf32> to vector<60xf32>
    %31 = vector.shape_cast %30 : vector<60xf32> to vector<60x1xf32>
    %cst_24 = arith.constant 0.010416667 : f32
    %32 = vector.broadcast %cst_24 : f32 to vector<60x1xf32>
    %33 = arith.mulf %31, %32 : vector<60x1xf32>
    %cst_25 = arith.constant 9.99999974E-5 : f32
    %34 = vector.broadcast %cst_25 : f32 to vector<60x1xf32>
    %35 = arith.addf %33, %34 : vector<60x1xf32>
    %36 = math.rsqrt %35 : vector<60x1xf32>
    %37 = vector.broadcast %36 : vector<60x1xf32> to vector<60x128xf32>
    %38 = arith.mulf %28, %37 : vector<60x128xf32>
    %c0_26 = arith.constant 0 : index
    %c0_27 = arith.constant 0 : index
    %c0_28 = arith.constant 0 : index
    %39 = vector.load %arg5[%c0_26, %c0_27, %c0_28] : memref<3x1x128xf32, #tpu.memory_space<vmem>>, vector<1x1x128xf32>
    %40 = vector.shape_cast %39 : vector<1x1x128xf32> to vector<1x128xf32>
    %41 = vector.broadcast %40 : vector<1x128xf32> to vector<60x128xf32>
    %42 = arith.mulf %38, %41 : vector<60x128xf32>
    %c0_29 = arith.constant 0 : index
    %c0_30 = arith.constant 0 : index
    %c0_31 = arith.constant 0 : index
    %43 = vector.load %arg6[%c0_29, %c0_30, %c0_31] : memref<3x1x128xf32, #tpu.memory_space<vmem>>, vector<1x1x128xf32>
    %44 = vector.shape_cast %43 : vector<1x1x128xf32> to vector<1x128xf32>
    %45 = vector.broadcast %44 : vector<1x128xf32> to vector<60x128xf32>
    %46 = arith.addf %42, %45 : vector<60x128xf32>
    %cst_32 = arith.constant 0.000000e+00 : f32
    %47 = vector.broadcast %cst_32 : f32 to vector<60x128xf32>
    %48 = arith.maximumf %46, %47 : vector<60x128xf32>
    %49 = vector.broadcast %1 : vector<60x1xf32> to vector<60x128xf32>
    %50 = arith.mulf %48, %49 : vector<60x128xf32>
    %51 = arith.truncf %50 : vector<60x128xf32> to vector<60x128xbf16>
    %c2_33 = arith.constant 2 : index
    %c0_34 = arith.constant 0 : index
    %52 = vector.load %arg11[%c2_33, %c0_34] : memref<64x128xbf16, #tpu.memory_space<vmem>>, vector<60x128xbf16>
    tpu.vector_store %arg11[%c2_33, %c0_34], %51 {strides = array<i32>} : memref<64x128xbf16, #tpu.memory_space<vmem>>, vector<60x128xbf16>,
    %c0_35 = arith.constant 0 : index
    %c0_36 = arith.constant 0 : index
    %53 = vector.load %arg11[%c0_35, %c0_36] : memref<64x128xbf16, #tpu.memory_space<vmem>>, vector<60x128xbf16>
    %c1_37 = arith.constant 1 : index
    %c0_38 = arith.constant 0 : index
    %54 = vector.load %arg11[%c1_37, %c0_38] : memref<64x128xbf16, #tpu.memory_space<vmem>>, vector<60x128xbf16>
    %c2_39 = arith.constant 2 : index
    %c0_40 = arith.constant 0 : index
    %55 = vector.load %arg11[%c2_39, %c0_40] : memref<64x128xbf16, #tpu.memory_space<vmem>>, vector<60x128xbf16>
    %c3_41 = arith.constant 3 : index
    %c0_42 = arith.constant 0 : index
    %56 = vector.load %arg11[%c3_41, %c0_42] : memref<64x128xbf16, #tpu.memory_space<vmem>>, vector<60x128xbf16>
    %c4_43 = arith.constant 4 : index
    %c0_44 = arith.constant 0 : index
    %57 = vector.load %arg11[%c4_43, %c0_44] : memref<64x128xbf16, #tpu.memory_space<vmem>>, vector<60x128xbf16>
    %58 = tpu.concatenate %53, %54, %55, %56, %57 in 1 : vector<60x128xbf16>, vector<60x128xbf16>, vector<60x128xbf16>, vector<60x128xbf16>, vector<60x128xbf16> -> vector<60x640xbf16>
    %c1_45 = arith.constant 1 : index
    %c0_46 = arith.constant 0 : index
    %c0_47 = arith.constant 0 : index
    %59 = vector.load %arg3[%c1_45, %c0_46, %c0_47] : memref<3x640x128xbf16, #tpu.memory_space<vmem>>, vector<1x640x128xbf16>
    %60 = vector.shape_cast %59 : vector<1x640x128xbf16> to vector<640x128xbf16>
    %cst_48 = arith.constant dense<0.000000e+00> : vector<60x128xf32>
    %61 = tpu.matmul %58, %60, %cst_48 {dimension_numbers = #tpu.dot_dimension_numbers<[1], [0], [0], [1], [0, 0, 1, 1], [], []>} : vector<60x640xbf16>, vector<640x128xbf16>, vector<60x128xf32> -> vector<60x128xf32>
    %c1_49 = arith.constant 1 : index
    %c0_50 = arith.constant 0 : index
    %c0_51 = arith.constant 0 : index
    %62 = vector.load %arg4[%c1_49, %c0_50, %c0_51] : memref<3x1x128xf32, #tpu.memory_space<vmem>>, vector<1x1x128xf32>
    %63 = vector.shape_cast %62 : vector<1x1x128xf32> to vector<1x128xf32>
    %64 = vector.broadcast %63 : vector<1x128xf32> to vector<60x128xf32>
    %65 = arith.addf %61, %64 : vector<60x128xf32>
    %cst_52 = arith.constant dense<0.000000e+00> : vector<60xf32>
    %66 = vector.multi_reduction <add>, %65, %cst_52 [1] : vector<60x128xf32> to vector<60xf32>
    %67 = vector.shape_cast %66 : vector<60xf32> to vector<60x1xf32>
    %cst_53 = arith.constant 0.010416667 : f32
    %68 = vector.broadcast %cst_53 : f32 to vector<60x1xf32>
    %69 = arith.mulf %67, %68 : vector<60x1xf32>
    %70 = vector.broadcast %69 : vector<60x1xf32> to vector<60x128xf32>
    %71 = arith.subf %65, %70 : vector<60x128xf32>
    %72 = vector.broadcast %0 : vector<1x128xf32> to vector<60x128xf32>
    %73 = arith.mulf %71, %72 : vector<60x128xf32>
    %74 = arith.mulf %73, %73 : vector<60x128xf32>
    %cst_54 = arith.constant dense<0.000000e+00> : vector<60xf32>
    %75 = vector.multi_reduction <add>, %74, %cst_54 [1] : vector<60x128xf32> to vector<60xf32>
    %76 = vector.shape_cast %75 : vector<60xf32> to vector<60x1xf32>
    %cst_55 = arith.constant 0.010416667 : f32
    %77 = vector.broadcast %cst_55 : f32 to vector<60x1xf32>
    %78 = arith.mulf %76, %77 : vector<60x1xf32>
    %cst_56 = arith.constant 9.99999974E-5 : f32
    %79 = vector.broadcast %cst_56 : f32 to vector<60x1xf32>
    %80 = arith.addf %78, %79 : vector<60x1xf32>
    %81 = math.rsqrt %80 : vector<60x1xf32>
    %82 = vector.broadcast %81 : vector<60x1xf32> to vector<60x128xf32>
    %83 = arith.mulf %73, %82 : vector<60x128xf32>
    %c1_57 = arith.constant 1 : index
    %c0_58 = arith.constant 0 : index
    %c0_59 = arith.constant 0 : index
    %84 = vector.load %arg5[%c1_57, %c0_58, %c0_59] : memref<3x1x128xf32, #tpu.memory_space<vmem>>, vector<1x1x128xf32>
    %85 = vector.shape_cast %84 : vector<1x1x128xf32> to vector<1x128xf32>
    %86 = vector.broadcast %85 : vector<1x128xf32> to vector<60x128xf32>
    %87 = arith.mulf %83, %86 : vector<60x128xf32>
    %c1_60 = arith.constant 1 : index
    %c0_61 = arith.constant 0 : index
    %c0_62 = arith.constant 0 : index
    %88 = vector.load %arg6[%c1_60, %c0_61, %c0_62] : memref<3x1x128xf32, #tpu.memory_space<vmem>>, vector<1x1x128xf32>
    %89 = vector.shape_cast %88 : vector<1x1x128xf32> to vector<1x128xf32>
    %90 = vector.broadcast %89 : vector<1x128xf32> to vector<60x128xf32>
    %91 = arith.addf %87, %90 : vector<60x128xf32>
    %cst_63 = arith.constant 0.000000e+00 : f32
    %92 = vector.broadcast %cst_63 : f32 to vector<60x128xf32>
    %93 = arith.maximumf %91, %92 : vector<60x128xf32>
    %94 = vector.broadcast %1 : vector<60x1xf32> to vector<60x128xf32>
    %95 = arith.mulf %93, %94 : vector<60x128xf32>
    %96 = arith.truncf %95 : vector<60x128xf32> to vector<60x128xbf16>
    %c2_64 = arith.constant 2 : index
    %c0_65 = arith.constant 0 : index
    %97 = vector.load %arg11[%c2_64, %c0_65] : memref<64x128xbf16, #tpu.memory_space<vmem>>, vector<60x128xbf16>
    tpu.vector_store %arg11[%c2_64, %c0_65], %96 {strides = array<i32>} : memref<64x128xbf16, #tpu.memory_space<vmem>>, vector<60x128xbf16>,
    %c0_66 = arith.constant 0 : index
    %c0_67 = arith.constant 0 : index
    %98 = vector.load %arg11[%c0_66, %c0_67] : memref<64x128xbf16, #tpu.memory_space<vmem>>, vector<60x128xbf16>
    %c1_68 = arith.constant 1 : index
    %c0_69 = arith.constant 0 : index
    %99 = vector.load %arg11[%c1_68, %c0_69] : memref<64x128xbf16, #tpu.memory_space<vmem>>, vector<60x128xbf16>
    %c2_70 = arith.constant 2 : index
    %c0_71 = arith.constant 0 : index
    %100 = vector.load %arg11[%c2_70, %c0_71] : memref<64x128xbf16, #tpu.memory_space<vmem>>, vector<60x128xbf16>
    %c3_72 = arith.constant 3 : index
    %c0_73 = arith.constant 0 : index
    %101 = vector.load %arg11[%c3_72, %c0_73] : memref<64x128xbf16, #tpu.memory_space<vmem>>, vector<60x128xbf16>
    %c4_74 = arith.constant 4 : index
    %c0_75 = arith.constant 0 : index
    %102 = vector.load %arg11[%c4_74, %c0_75] : memref<64x128xbf16, #tpu.memory_space<vmem>>, vector<60x128xbf16>
    %103 = tpu.concatenate %98, %99, %100, %101, %102 in 1 : vector<60x128xbf16>, vector<60x128xbf16>, vector<60x128xbf16>, vector<60x128xbf16>, vector<60x128xbf16> -> vector<60x640xbf16>
    %c2_76 = arith.constant 2 : index
    %c0_77 = arith.constant 0 : index
    %c0_78 = arith.constant 0 : index
    %104 = vector.load %arg3[%c2_76, %c0_77, %c0_78] : memref<3x640x128xbf16, #tpu.memory_space<vmem>>, vector<1x640x128xbf16>
    %105 = vector.shape_cast %104 : vector<1x640x128xbf16> to vector<640x128xbf16>
    %cst_79 = arith.constant dense<0.000000e+00> : vector<60x128xf32>
    %106 = tpu.matmul %103, %105, %cst_79 {dimension_numbers = #tpu.dot_dimension_numbers<[1], [0], [0], [1], [0, 0, 1, 1], [], []>} : vector<60x640xbf16>, vector<640x128xbf16>, vector<60x128xf32> -> vector<60x128xf32>
    %c2_80 = arith.constant 2 : index
    %c0_81 = arith.constant 0 : index
    %c0_82 = arith.constant 0 : index
    %107 = vector.load %arg4[%c2_80, %c0_81, %c0_82] : memref<3x1x128xf32, #tpu.memory_space<vmem>>, vector<1x1x128xf32>
    %108 = vector.shape_cast %107 : vector<1x1x128xf32> to vector<1x128xf32>
    %109 = vector.broadcast %108 : vector<1x128xf32> to vector<60x128xf32>
    %110 = arith.addf %106, %109 : vector<60x128xf32>
    %cst_83 = arith.constant dense<0.000000e+00> : vector<60xf32>
    %111 = vector.multi_reduction <add>, %110, %cst_83 [1] : vector<60x128xf32> to vector<60xf32>
    %112 = vector.shape_cast %111 : vector<60xf32> to vector<60x1xf32>
    %cst_84 = arith.constant 0.010416667 : f32
    %113 = vector.broadcast %cst_84 : f32 to vector<60x1xf32>
    %114 = arith.mulf %112, %113 : vector<60x1xf32>
    %115 = vector.broadcast %114 : vector<60x1xf32> to vector<60x128xf32>
    %116 = arith.subf %110, %115 : vector<60x128xf32>
    %117 = vector.broadcast %0 : vector<1x128xf32> to vector<60x128xf32>
    %118 = arith.mulf %116, %117 : vector<60x128xf32>
    %119 = arith.mulf %118, %118 : vector<60x128xf32>
    %cst_85 = arith.constant dense<0.000000e+00> : vector<60xf32>
    %120 = vector.multi_reduction <add>, %119, %cst_85 [1] : vector<60x128xf32> to vector<60xf32>
    %121 = vector.shape_cast %120 : vector<60xf32> to vector<60x1xf32>
    %cst_86 = arith.constant 0.010416667 : f32
    %122 = vector.broadcast %cst_86 : f32 to vector<60x1xf32>
    %123 = arith.mulf %121, %122 : vector<60x1xf32>
    %cst_87 = arith.constant 9.99999974E-5 : f32
    %124 = vector.broadcast %cst_87 : f32 to vector<60x1xf32>
    %125 = arith.addf %123, %124 : vector<60x1xf32>
    %126 = math.rsqrt %125 : vector<60x1xf32>
    %127 = vector.broadcast %126 : vector<60x1xf32> to vector<60x128xf32>
    %128 = arith.mulf %118, %127 : vector<60x128xf32>
    %c2_88 = arith.constant 2 : index
    %c0_89 = arith.constant 0 : index
    %c0_90 = arith.constant 0 : index
    %129 = vector.load %arg5[%c2_88, %c0_89, %c0_90] : memref<3x1x128xf32, #tpu.memory_space<vmem>>, vector<1x1x128xf32>
    %130 = vector.shape_cast %129 : vector<1x1x128xf32> to vector<1x128xf32>
    %131 = vector.broadcast %130 : vector<1x128xf32> to vector<60x128xf32>
    %132 = arith.mulf %128, %131 : vector<60x128xf32>
    %c2_91 = arith.constant 2 : index
    %c0_92 = arith.constant 0 : index
    %c0_93 = arith.constant 0 : index
    %133 = vector.load %arg6[%c2_91, %c0_92, %c0_93] : memref<3x1x128xf32, #tpu.memory_space<vmem>>, vector<1x1x128xf32>
    %134 = vector.shape_cast %133 : vector<1x1x128xf32> to vector<1x128xf32>
    %135 = vector.broadcast %134 : vector<1x128xf32> to vector<60x128xf32>
    %136 = arith.addf %132, %135 : vector<60x128xf32>
    %cst_94 = arith.constant 0.000000e+00 : f32
    %137 = vector.broadcast %cst_94 : f32 to vector<60x128xf32>
    %138 = arith.maximumf %136, %137 : vector<60x128xf32>
    %139 = arith.truncf %138 : vector<60x128xf32> to vector<60x128xbf16>
    %c0_95 = arith.constant 0 : index
    %c0_96 = arith.constant 0 : index
    %140 = vector.load %arg8[%c0_95, %c0_96] : memref<128x128xbf16, #tpu.memory_space<vmem>>, vector<128x128xbf16>
    %cst_97 = arith.constant dense<0.000000e+00> : vector<60x128xf32>
    %141 = tpu.matmul %139, %140, %cst_97 {dimension_numbers = #tpu.dot_dimension_numbers<[1], [0], [0], [1], [0, 0, 1, 1], [], []>} : vector<60x128xbf16>, vector<128x128xbf16>, vector<60x128xf32> -> vector<60x128xf32>
    %c0_98 = arith.constant 0 : index
    %c0_99 = arith.constant 0 : index
    %142 = vector.load %arg9[%c0_98, %c0_99] : memref<1x128xf32, #tpu.memory_space<vmem>>, vector<1x128xf32>
    %143 = vector.broadcast %142 : vector<1x128xf32> to vector<60x128xf32>
    %144 = arith.addf %141, %143 : vector<60x128xf32>
    %c2_100 = arith.constant 2 : index
    %c0_101 = arith.constant 0 : index
    %145 = vector.load %arg1[%c2_100, %c0_101] : memref<64x128xf32, #tpu.memory_space<vmem>>, vector<60x128xf32>
    %146 = arith.addf %145, %144 : vector<60x128xf32>
    %147 = vector.broadcast %1 : vector<60x1xf32> to vector<60x128xf32>
    %148 = arith.mulf %146, %147 : vector<60x128xf32>
    %c0_102 = arith.constant 0 : index
    %c0_103 = arith.constant 0 : index
    %149 = vector.load %arg10[%c0_102, %c0_103] : memref<64x128xf32, #tpu.memory_space<vmem>>, vector<60x128xf32>
    tpu.vector_store %arg10[%c0_102, %c0_103], %148 {strides = array<i32>} : memref<64x128xf32, #tpu.memory_space<vmem>>, vector<60x128xf32>,
    %cst_104 = arith.constant 0.000000e+00 : f32
    %150 = vector.broadcast %cst_104 : f32 to vector<4x128xf32>
    %c60 = arith.constant 60 : index
    %c0_105 = arith.constant 0 : index
    %151 = vector.load %arg10[%c60, %c0_105] : memref<64x128xf32, #tpu.memory_space<vmem>>, vector<4x128xf32>
    tpu.vector_store %arg10[%c60, %c0_105], %150 {strides = array<i32>} : memref<64x128xf32, #tpu.memory_space<vmem>>, vector<4x128xf32>,
    return
  }
  func.func @transform_0(%arg0: i32) -> (i32, i32) {
    %c0_i32 = arith.constant 0 : i32
    %c0_i32_0 = arith.constant 0 : i32
    return %arg0, %c0_i32 : i32, i32
  }
  func.func @transform_1(%arg0: i32) -> (i32, i32) {
    %c0_i32 = arith.constant 0 : i32
    %c0_i32_0 = arith.constant 0 : i32
    return %arg0, %c0_i32 : i32, i32
  }
  func.func @transform_2(%arg0: i32) -> (i32, i32, i32) {
    %c0_i32 = arith.constant 0 : i32
    %c0_i32_0 = arith.constant 0 : i32
    %c0_i32_1 = arith.constant 0 : i32
    %c0_i32_2 = arith.constant 0 : i32
    return %c0_i32, %c0_i32_0, %c0_i32_1 : i32, i32, i32
  }
  func.func @transform_3(%arg0: i32) -> (i32, i32, i32) {
    %c0_i32 = arith.constant 0 : i32
    %c0_i32_0 = arith.constant 0 : i32
    %c0_i32_1 = arith.constant 0 : i32
    %c0_i32_2 = arith.constant 0 : i32
    return %c0_i32, %c0_i32_0, %c0_i32_1 : i32, i32, i32
  }
  func.func @transform_4(%arg0: i32) -> (i32, i32, i32) {
    %c0_i32 = arith.constant 0 : i32
    %c0_i32_0 = arith.constant 0 : i32
    %c0_i32_1 = arith.constant 0 : i32
    %c0_i32_2 = arith.constant 0 : i32
    return %c0_i32, %c0_i32_0, %c0_i32_1 : i32, i32, i32
  }
  func.func @transform_5(%arg0: i32) -> (i32, i32, i32) {
    %c0_i32 = arith.constant 0 : i32
    %c0_i32_0 = arith.constant 0 : i32
    %c0_i32_1 = arith.constant 0 : i32
    %c0_i32_2 = arith.constant 0 : i32
    return %c0_i32, %c0_i32_0, %c0_i32_1 : i32, i32, i32
  }
  func.func @transform_6(%arg0: i32) -> (i32, i32) {
    %c0_i32 = arith.constant 0 : i32
    %c0_i32_0 = arith.constant 0 : i32
    %c0_i32_1 = arith.constant 0 : i32
    return %c0_i32, %c0_i32_0 : i32, i32
  }
  func.func @transform_7(%arg0: i32) -> (i32, i32) {
    %c0_i32 = arith.constant 0 : i32
    %c0_i32_0 = arith.constant 0 : i32
    %c0_i32_1 = arith.constant 0 : i32
    return %c0_i32, %c0_i32_0 : i32, i32
  }
  func.func @transform_8(%arg0: i32) -> (i32, i32) {
    %c0_i32 = arith.constant 0 : i32
    %c0_i32_0 = arith.constant 0 : i32
    %c0_i32_1 = arith.constant 0 : i32
    return %c0_i32, %c0_i32_0 : i32, i32
  }
  func.func @transform_9(%arg0: i32) -> (i32, i32) {
    %c0_i32 = arith.constant 0 : i32
    %c0_i32_0 = arith.constant 0 : i32
    return %arg0, %c0_i32 : i32, i32
  }
}

</mosaic_0001>

<bundles_post_ra>
// kernel: conv_relu_norm_forward.1
= control target key start
LH: loop header
LB: loop body
LE: loop exit
PB: predicated region body
PF: predicated region fallthrough
CT: control target
= control target key end

     0   :  { %s4280_s30 = smov 0   ;;  %s5288_s0 = inlined_call_operand.vmem [shape: f32[128,128], index: 0, kind: input, shape index: {}]   ;;  %s5289_s1 = inlined_call_operand.vmem [shape: f32[128,1], index: 1, kind: input, shape index: {}]   ;;  %s5290_s2 = inlined_call_operand.vmem [shape: bf16[3,640,128], index: 2, kind: input, shape index: {}]   ;;  %s5291_s3 = inlined_call_operand.vmem [shape: f32[3,1,128], index: 3, kind: input, shape index: {}]   ;;  %s5292_s4 = inlined_call_operand.vmem [shape: f32[3,1,128], index: 4, kind: input, shape index: {}]   ;;  %s5293_s5 = inlined_call_operand.vmem [shape: f32[3,1,128], index: 5, kind: input, shape index: {}]   ;;  %s5294_s6 = inlined_call_operand.vmem [shape: f32[1,128], index: 6, kind: input, shape index: {}]   ;;  %s5295_s7 = inlined_call_operand.vmem [shape: bf16[128,128], index: 7, kind: input, shape index: {}]   ;;  %s5296_s8 = inlined_call_operand.vmem [shape: f32[1,128], index: 8, kind: input, shape index: {}]   ;;  %s5297_s9 = inlined_call_operand.vmem [shape: f32[128,128], index: 9, kind: output, shape index: {}]  }
   0x1 LB: > { %s3247_s10 = sadd.s32 4294967295, %s4226_s30   ;;  %p3251_p0 = scmp.ge.s32.totalorder %s4226_s30, 1  ;;  %s4226_s30 = sphi %s4280_s30, %s19_s30  }
   0x2   : > { %p299_p1 = scmp.lt.s32.totalorder %s4226_s30, 3 }
   0x4   : > { %p300_p2 = pnand %p3251_p0, %p299_p1 }
   0x5   : > { %s3252_s11 = sshll.u32 (!%p300_p2), %s3247_s10, 3 }
   0x6   : > { %303 = sbr.rel (%p300_p2) target bundleno = 1839 (0x72f), region = 56  ;;  %p341_p3 = scmp.lt.s32.totalorder (!%p300_p2), %s3252_s11, 15 }
   0xb   : > { %v3971_v0 = vld [vmem:[%s5290_s2 + $0x38] sm:$0xff]  ;;  %v4228_v2 = vmov 0   ;;  %v3970_v3 = vld [vmem:[%s5290_s2 + $0x30] sm:$0xff]  ;;  %s5301_s11 = smov (!%p341_p3, %s3252_s11), 15  ;;  %v3969_v5 = vld [vmem:[%s5290_s2 + $0x28] sm:$0xff]  ;;  %vm525_vm1 = vcmask 1046528  }
   0xc   : > { %v3979_v1 = vld [vmem:[%s5290_s2 + $0x78] sm:$0xff]  ;;  %4157 = vset.pattern.permute.xlu1 %v4228_v2  ;;  %4156 = vset.pattern.permute.xlu0 %v4228_v2  ;;  %s4300_s20 = sshll.u32 %s5301_s11, 3  ;;  %v3968_v14 = vld [vmem:[%s5290_s2 + $0x20] sm:$0xff]  ;;  %v3978_v16 = vld [vmem:[%s5290_s2 + $0x70] sm:$0xff]  ;;  %vm486_vm0 = vsmask.f32 7424 }
   0xd   : > { %v3987_v4 = vld [vmem:[%s5290_s2 + $0xb8] sm:$0xff]  ;;  %4158 = vset.pattern.permute.xlu2 %v4228_v2  ;;  %909 = vmatpush.bf16.msra.mxu0 %v3971_v0  ;;  %s4306_s23 = scalar_lea.vmem %s5289_s1, %s4300_s20  ;;  %v3986_v17 = vld [vmem:[%s5290_s2 + $0xb0] sm:$0xff]  ;;  %v3977_v19 = vld [vmem:[%s5290_s2 + $0x68] sm:$0xff]  ;;  %s4374_s26 = scalar_lea.vmem %s5288_s0, %s4300_s20  ;;  %vm540_vm2 = vsmask.f32 6400  ;;  %vm573_vm3 = vcmask 1045504  }
   0xe   : > { %938 = vmatpush.bf16.msra.mxu1 %v3979_v1  ;;  %967 = vmatpush.bf16.msra.mxu2 %v3987_v4  ;;  %v377_v6 = vld [vmem:[%s4306_s23 + $0x10] sm:$0xff]  ;;  %v375_v7 = vld [vmem:[%s4306_s23] sm:$0xff]  ;;  %v378_v9 = vld [vmem:[%s4306_s23 + $0x18] sm:$0xff]  ;;  %vm1068_vm4 = vcmask 1043456   ;;  %vm1324_vm14 = vcmask 1040384   ;;  %vm1325_vm15 = vcmask 1044484   ;;  %s5255_s13 = scalar_lea.vmem %s5297_s9, %s4300_s20 }
   0xf   : > { %395 = vperm.xlu1 %4157, %v377_v6   ;;  %385 = vperm.xlu0 %4156, %v375_v7   ;;  %v379_v8 = vld [vmem:[%s4306_s23 + $0x20] sm:$0xff]  ;;  %v376_v10 = vld [vmem:[%s4306_s23 + $0x8] sm:$0xff]  ;;  %v382_v12 = vld [vmem:[%s4306_s23 + $0x38] sm:$0xff] }
  0x10   : > { %405 = vperm.xlu2 %4158, %v379_v8   ;;  %v380_v11 = vld [vmem:[%s4306_s23 + $0x28] sm:$0xff]  ;;  %v381_v13 = vld [vmem:[%s4306_s23 + $0x30] sm:$0xff]  ;;  %v3967_v15 = vld [vmem:[%s5290_s2 + $0x18] sm:$0xff] }
  0x11   : > { %910 = vmatpush.bf16.msra.mxu0 %v3970_v3  ;;  %v3995_v18 = vld [vmem:[%s5290_s2 + $0xf8] sm:$0xff]  ;;  %v3985_v20 = vld [vmem:[%s5290_s2 + $0xa8] sm:$0xff]  ;;  %v3994_v21 = vld [vmem:[%s5290_s2 + $0xf0] sm:$0xff] }
  0x12   : > { %939 = vmatpush.bf16.msra.mxu1 %v3978_v16  ;;  %968 = vmatpush.bf16.msra.mxu2 %v3986_v17  ;;  %v3966_v22 = vld [vmem:[%s5290_s2 + $0x10] sm:$0xff]  ;;  %v3965_v23 = vld [vmem:[%s5290_s2 + $0x8] sm:$0xff]  ;;  %v3976_v24 = vld [vmem:[%s5290_s2 + $0x60] sm:$0xff] }
  0x13   : > { %996 = vmatpush.bf16.msra.mxu3 %v3995_v18  ;;  %v3984_v25 = vld [vmem:[%s5290_s2 + $0xa0] sm:$0xff]  ;;  %v3993_v26 = vld [vmem:[%s5290_s2 + $0xe8] sm:$0xff]  ;;  %v3975_v29 = vld [vmem:[%s5290_s2 + $0x58] sm:$0xff] }
  0x14   : > { %v3964_v27 = vld [vmem:[%s5290_s2] sm:$0xff]  ;;  %v3983_v30 = vld [vmem:[%s5290_s2 + $0x98] sm:$0xff]  ;;  %v3974_v33 = vld [vmem:[%s5290_s2 + $0x50] sm:$0xff] }
  0x15   : > { %911 = vmatpush.bf16.msra.mxu0 %v3969_v5  ;;  %v3992_v31 = vld [vmem:[%s5290_s2 + $0xe0] sm:$0xff]  ;;  %v372_v34 = vld [vmem:[%s4374_s26 + $0x28] sm:$0xff]  ;;  %v3982_v35 = vld [vmem:[%s5290_s2 + $0x90] sm:$0xff] }
  0x16   : > { %940 = vmatpush.bf16.msra.mxu1 %v3977_v19  ;;  %969 = vmatpush.bf16.msra.mxu2 %v3985_v20  ;;  %v371_v32 = vld [vmem:[%s4374_s26 + $0x20] sm:$0xff]  ;;  %v3991_v36 = vld [vmem:[%s5290_s2 + $0xd8] sm:$0xff]  ;;  %v3973_v40 = vld [vmem:[%s5290_s2 + $0x48] sm:$0xff] }
  0x17   : > { %400 = vperm.xlu1 %4157, %v378_v9   ;;  %390 = vperm.xlu0 %4156, %v376_v10   ;;  %v3981_v41 = vld [vmem:[%s5290_s2 + $0x88] sm:$0xff]  ;;  %v3990_v42 = vld [vmem:[%s5290_s2 + $0xd0] sm:$0xff]  ;;  %v4003_v44 = vld [vmem:[%s5290_s2 + $0x138] sm:$0xff] }
  0x18   : > { %410 = vperm.xlu2 %4158, %v380_v11   ;;  %997 = vmatpush.bf16.msra.mxu3 %v3994_v21  ;;  %v3972_v45 = vld [vmem:[%s5290_s2 + $0x40] sm:$0xff]  ;;  %v3989_v47 = vld [vmem:[%s5290_s2 + $0xc8] sm:$0xff]  ;;  %v4002_v49 = vld [vmem:[%s5290_s2 + $0x130] sm:$0xff] }
  0x19   : > { %912 = vmatpush.bf16.msra.mxu0 %v3968_v14  ;;  %v3980_v46 = vld [vmem:[%s5290_s2 + $0x80] sm:$0xff]  ;;  %v4001_v52 = vld [vmem:[%s5290_s2 + $0x128] sm:$0xff]  ;;  %v369_v53 = vld [vmem:[%s4374_s26 + $0x10] sm:$0xff] }
  0x1a   : > { %941 = vmatpush.bf16.msra.mxu1 %v3976_v24  ;;  %970 = vmatpush.bf16.msra.mxu2 %v3984_v25  ;;  %v3988_v48 = vld [vmem:[%s5290_s2 + $0xc0] sm:$0xff]  ;;  %v370_v55 = vld [vmem:[%s4374_s26 + $0x18] sm:$0xff]  ;;  %v368_v56 = vld [vmem:[%s4374_s26 + $0x8] sm:$0xff] }
  0x1b   : > { %v367_v54 = vld [vmem:[%s4374_s26] sm:$0xff]  ;;  %v374_v2 = vld [vmem:[%s4374_s26 + $0x38] sm:$0xff]  ;;  %v373_v3 = vld [vmem:[%s4374_s26 + $0x30] sm:$0xff] }
  0x1c   : > { %998 = vmatpush.bf16.msra.mxu3 %v3993_v26  ;;  %v4000_v1 = vld [vmem:[%s5290_s2 + $0x120] sm:$0xff]  ;;  %v3999_v9 = vld [vmem:[%s5290_s2 + $0x118] sm:$0xff] }
  0x1d   : > { %913 = vmatpush.bf16.msra.mxu0 %v3967_v15 }
  0x1e   : > { %942 = vmatpush.bf16.msra.mxu1 %v3975_v29  ;;  %971 = vmatpush.bf16.msra.mxu2 %v3983_v30 }
  0x1f   : > { %420 = vperm.xlu1 %4157, %v382_v12   ;;  %415 = vperm.xlu0 %4156, %v381_v13  }
  0x20   : > { %999 = vmatpush.bf16.msra.mxu3 %v3992_v31 }
  0x21   : > { %914 = vmatpush.bf16.msra.mxu0 %v3966_v22 }
  0x22   : > { %943 = vmatpush.bf16.msra.mxu1 %v3974_v33  ;;  %972 = vmatpush.bf16.msra.mxu2 %v3982_v35 }
  0x24   : > { %1000 = vmatpush.bf16.msra.mxu3 %v3991_v36 }
  0x25   : > { %915 = vmatpush.bf16.msra.mxu0 %v3965_v23 }
  0x26   : > { %944 = vmatpush.bf16.msra.mxu1 %v3973_v40  ;;  %973 = vmatpush.bf16.msra.mxu2 %v3981_v41 }
  0x28   : > { %1001 = vmatpush.bf16.msra.mxu3 %v3990_v42 }
  0x29   : > { %916 = vmatpush.bf16.msra.mxu0 %v3964_v27 }
  0x2a   : > { %945 = vmatpush.bf16.msra.mxu1 %v3972_v45  ;;  %974 = vmatpush.bf16.msra.mxu2 %v3980_v46  ;;  %v3996_v46 = vld [vmem:[%s5290_s2 + $0x100] sm:$0xff] }
  0x2c   : > { %1002 = vmatpush.bf16.msra.mxu3 %v3989_v47 }
  0x2d   : > { %1025 = vmatpush.bf16.msrb.mxu0 %v4003_v44 }
  0x30   : > { %1003 = vmatpush.bf16.msra.mxu3 %v3988_v48 }
  0x31   : > { %1026 = vmatpush.bf16.msrb.mxu0 %v4002_v49 }
  0x35   : > { %1027 = vmatpush.bf16.msrb.mxu0 %v4001_v52 }
  0x39   : > { %1028 = vmatpush.bf16.msrb.mxu0 %v4000_v1 }
  0x3d   : > { %1029 = vmatpush.bf16.msrb.mxu0 %v3999_v9 }
  0x6a   : > { %v406_v28 = vpop.permute.xlu2 %405 }
  0x6b   : > { %v427_v37 = vmul.f32 %v406_v28, %v371_v32  ;;  %v3998_v32 = vld [vmem:[%s5290_s2 + $0x110] sm:$0xff] }
  0x6c   : > { %1030 = vmatpush.bf16.msrb.mxu0 %v3998_v32 }
  0x72   : > { %v411_v38 = vpop.permute.xlu2 %410 }
  0x73   : > { %v428_v39 = vmul.f32 %v411_v38, %v372_v34 }
  0x75   : > { %v4109_v43 = vpack.c.bf16 %v428_v39, %v427_v37  ;;  %v3997_v37 = vld [vmem:[%s5290_s2 + $0x108] sm:$0xff] }
  0x76   : > { %1031 = vmatpush.bf16.msrb.mxu0 %v3997_v37 }
  0x77   : > { %4141 = vst [vmem:[#allocation2 + $0x10] sm:$0xff] %v4109_v43  }
  0x7a   : > { %1032 = vmatpush.bf16.msrb.mxu0 %v3996_v46 }
  0x7e   : > { %v4453_v36 = vld [vmem:[#allocation2 + $0x10] sm:$0xff] }
  0x7f   : > { %v503_v38 = vshll.u32 %v4453_v36, 16  ;;  %v507_v39 = vshrl.u32 %v4453_v36, 16  ;;  %v529_v43 = vrot.slane %v4453_v36, 1 }
  0x81   : > { %v396_v50 = vpop.permute.xlu1 %395  ;;  %v386_v51 = vpop.permute.xlu0 %385  ;;  %v505_v41 = vrot.slane %v503_v38, 1  ;;  %v553_v44 = vrot.slane %v507_v39, 1  ;;  %v554_v45 = vrot.slane %v503_v38, 2 }
  0x82   : > { %v425_v57 = vmul.f32 %v396_v50, %v369_v53  ;;  %v423_v60 = vmul.f32 %v386_v51, %v367_v54 }
  0x83   : > { %v555_v50 = vor.u32 %v554_v45, %v553_v44 }
  0x89   : > { %v401_v58 = vpop.permute.xlu1 %400  ;;  %v391_v59 = vpop.permute.xlu0 %390 }
  0x8a   : > { %v426_v61 = vmul.f32 %v401_v58, %v370_v55  ;;  %v424_v62 = vmul.f32 %v391_v59, %v368_v56  ;;  %v509_v58 = vor.u32 %v507_v39, %v505_v41 }
  0x8c   : > { %v4104_v63 = vpack.c.bf16 %v426_v61, %v425_v57  ;;  %v4421_v0 = vpack.c.bf16 %v424_v62, %v423_v60 }
  0x8e   : > { %4140 = vst [vmem:[#allocation2 + $0x8] sm:$0xff] %v4104_v63   ;;  %917 = vmatmul.bf16.vlgmr.msra.gmra.mxu0 %v4421_v0  ;;  %v490_v6 = vshll.u32 %v4421_v0, 16  ;;  %v488_v13 = vshrl.u32 %v4421_v0, 16  ;;  %v4119_v16 = vunpack.c.h.b16 %v4421_v0 }
  0x8f   : > { %4100 = vst [vmem:[#allocation2] sm:$0xff] %v4421_v0  }
  0x90   : > { %v492_v12 = vrot.slane %v490_v6, 1 }
  0x91   : > { %v421_v4 = vpop.permute.xlu1 %420  ;;  %v416_v5 = vpop.permute.xlu0 %415 }
  0x92   : > { %v430_v7 = vmul.f32 %v421_v4, %v374_v2  ;;  %v429_v8 = vmul.f32 %v416_v5, %v373_v3  ;;  %v493_v19 = vor.u32 %v492_v12, %v488_v13 }
  0x94   : > { %v4434_v10 = vpack.c.bf16 %v430_v7, %v429_v8 }
  0x95   : > { %v4436_v11 = vld [vmem:[#allocation2 + $0x8] sm:$0xff] }
  0x96   : > { %4142 = vst [vmem:[#allocation2 + $0x18] sm:$0xff] %v4434_v10   ;;  %v456_v14 = vld [vmem:[#allocation2] sm:$0xe]  ;;  %v495_v15 = vshll.u32 %v4436_v11, 16  ;;  %v499_v18 = vshrl.u32 %v4436_v11, 16  ;;  %v527_v22 = vrot.slane %v4436_v11, 1  ;;  %v4122_v51 = vunpack.c.l.b16 %v4434_v10 }
  0x97   : > { %v523_v17 = vunpack.c.l.b16 %v456_v14  ;;  %v558_v55 = vshrl.u32 %v4434_v10, 16  ;;  %v561_v56 = vshll.u32 %v4434_v10, 16  ;;  %v458_v5 = vld [vmem:[#allocation2] sm:$0xc]  ;;  %v575_v14 = vrot.slane %v4436_v11, 2 }
  0x98   : > { %v497_v20 = vrot.slane %v495_v15, 1  ;;  %v549_v23 = vrot.slane %v499_v18, 1  ;;  %v550_v24 = vrot.slane %v495_v15, 2  ;;  %v530_v49 = vsel %vm525_vm1, %v527_v22, %v529_v43 }
  0x99   : > { %v524_v21 = vpack.c.b16 %v4119_v16, %v523_v17  ;;  %v560_v62 = vrot.slane %v558_v55, 1  ;;  %v563_v63 = vrot.slane %v561_v56, 2  ;;  %v571_v7 = vunpack.c.l.b16 %v458_v5 }
  0x9a   : > { %v498_v25 = vsel %vm486_vm0, %v493_v19, %v497_v20  ;;  %v551_v34 = vor.u32 %v550_v24, %v549_v23  ;;  %v501_v40 = vor.u32 %v499_v18, %v497_v20  ;;  %v577_v17 = vrot.slane %v4453_v36, 2 }
  0x9b   : > { %v526_v26 = vrot.slane %v524_v21, 1  ;;  %v542_v27 = vshrl.u32 %v524_v21, 16  ;;  %v545_v28 = vshll.u32 %v524_v21, 16  ;;  %946 = vmatmul.bf16.vlgmr.msra.gmra.mxu1 %v498_v25  ;;  %v564_v4 = vor.u32 %v563_v63, %v560_v62 }
  0x9c   : > { %v506_v47 = vsel %vm486_vm0, %v501_v40, %v505_v41  ;;  %v556_v53 = vsel %vm540_vm2, %v551_v34, %v555_v50  ;;  %v572_v8 = vpack.c.b16 %v4119_v16, %v571_v7  ;;  %v578_v18 = vsel %vm573_vm3, %v575_v14, %v577_v17 }
  0x9d   : > { %v528_v29 = vsel %vm525_vm1, %v526_v26, %v527_v22  ;;  %v544_v30 = vrot.slane %v542_v27, 1  ;;  %v547_v31 = vrot.slane %v545_v28, 2  ;;  %v455_v42 = vld [vmem:[#allocation2 + $0x1c] sm:$0x7]  ;;  %v565_v6 = vsel %vm540_vm2, %v555_v50, %v564_v4 }
  0x9e   : > { %975 = vmatmul.bf16.vlgmr.msra.gmra.mxu2 %v528_v29  ;;  %922 = vmatmul.bf16.gmra.mxu0 %v4436_v11  ;;  %v484_v48 = vunpack.c.l.b16 %v455_v42  ;;  %v454_v57 = vld [vmem:[#allocation2 + $0x1c] sm:$0x3]  ;;  %v574_v12 = vrot.slane %v572_v8, 2  ;;  %v579_v0 = vrot.slane %v4434_v10, 2  ;;  %v4485_v29 = vld [vmem:[%s5291_s3] ss:$0 sm:$0xff] }
  0x9f   : > { %v548_v33 = vor.u32 %v547_v31, %v544_v30  ;;  %v474_v60 = vunpack.c.l.b16 %v454_v57 }
  0xa0   : > { %v485_v52 = vpack.c.b16 %v484_v48, %v4122_v51  ;;  %v576_v15 = vsel %vm573_vm3, %v574_v12, %v575_v14  ;;  %v580_v16 = vsel %vm573_vm3, %v577_v17, %v579_v0 }
  0xa1   : > { %v552_v35 = vsel %vm540_vm2, %v548_v33, %v551_v34  ;;  %v478_v2 = vpack.c.b16 %v474_v60, %v4122_v51 }
  0xa2   : > { %1004 = vmatmul.bf16.vlgmr.msra.gmra.mxu3 %v552_v35  ;;  %v511_v54 = vshll.u32 %v485_v52, 16  ;;  %v531_v61 = vrot.slane %v485_v52, 1  ;;  %v515_v9 = vshrl.u32 %v485_v52, 16 }
  0xa4   : > { %v513_v59 = vrot.slane %v511_v54, 1  ;;  %v532_v3 = vsel %vm525_vm1, %v529_v43, %v531_v61 }
  0xa6   : > { %v514_v1 = vsel %vm486_vm0, %v509_v58, %v513_v59  ;;  %v517_v13 = vor.u32 %v515_v9, %v513_v59 }
  0xab   : > { %951 = vmatmul.bf16.gmra.mxu1 %v506_v47 }
  0xae   : > { %980 = vmatmul.bf16.gmra.mxu2 %v530_v49  ;;  %927 = vmatmul.bf16.gmra.mxu0 %v4453_v36 }
  0xb2   : > { %1009 = vmatmul.bf16.gmra.mxu3 %v556_v53 }
  0xbb   : > { %956 = vmatmul.bf16.gmra.mxu1 %v514_v1 }
  0xbe   : > { %985 = vmatmul.bf16.gmra.mxu2 %v532_v3  ;;  %932 = vmatmul.bf16.gmra.mxu0 %v478_v2 }
  0xc2   : > { %1014 = vmatmul.bf16.gmra.mxu3 %v565_v6 }
  0xcb   : > { %961 = vmatmul.bf16.gmra.mxu1 %v517_v13 }
  0xce   : > { %990 = vmatmul.bf16.gmra.mxu2 %v531_v61  ;;  %1033 = vmatmul.bf16.vlgmr.msrb.gmra.mxu0 %v576_v15 }
  0xd2   : > { %1019 = vmatmul.bf16.gmra.mxu3 %v564_v4 }
  0xde   : > { %1038 = vmatmul.bf16.gmra.mxu0 %v578_v18 }
  0xee   : > { %1043 = vmatmul.bf16.gmra.mxu0 %v580_v16 }
  0xfe   : > { %1048 = vmatmul.bf16.gmra.mxu0 %v579_v0 }
 0x10b   : > { %v918_v19 = vpop.f32.mrf.mxu0 }
 0x10c   : > { %v919_v32 = vadd.f32 %v4485_v29, %v918_v19 }
 0x113   : > { %v920_v11 = vpop.f32.mrf.mxu0 }
 0x114   : > { %v921_v39 = vadd.f32 %v4485_v29, %v920_v11 }
 0x118   : > { %v947_v24 = vpop.f32.mrf.mxu1 }
 0x119   : > { %v948_v33 = vadd.f32 %v947_v24, %v919_v32 }
 0x11b   : > { %v923_v20 = vpop.f32.mrf.mxu0 }
 0x11c   : > { %v924_v47 = vadd.f32 %v4485_v29, %v923_v20 }
 0x120   : > { %v949_v28 = vpop.f32.mrf.mxu1 }
 0x121   : > { %v976_v25 = vpop.f32.mrf.mxu2  ;;  %v950_v42 = vadd.f32 %v949_v28, %v921_v39  ;;  %v4160_v39 = vld [vmem:[%s5294_s6] ss:$0 sm:$0xff] }
 0x122   : > { %v977_v34 = vadd.f32 %v976_v25, %v948_v33 }
 0x123   : > { %v925_v21 = vpop.f32.mrf.mxu0 }
 0x124   : > { %v926_v55 = vadd.f32 %v4485_v29, %v925_v21 }
 0x125   : > { %v1005_v26 = vpop.f32.mrf.mxu3 }
 0x126   : > { %v1006_v36 = vadd.f32 %v1005_v26, %v977_v34 }
 0x128   : > { %v952_v35 = vpop.f32.mrf.mxu1 }
 0x129   : > { %v978_v10 = vpop.f32.mrf.mxu2  ;;  %v953_v50 = vadd.f32 %v952_v35, %v924_v47 }
 0x12a   : > { %v979_v43 = vadd.f32 %v978_v10, %v950_v42 }
 0x12b   : > { %v928_v22 = vpop.f32.mrf.mxu0 }
 0x12c   : > { %v929_v1 = vadd.f32 %v4485_v29, %v928_v22 }
 0x12d   : > { %v1007_v30 = vpop.f32.mrf.mxu3 }
 0x12e   : > { %v1008_v44 = vadd.f32 %v1007_v30, %v979_v43 }
 0x130   : > { %v954_v45 = vpop.f32.mrf.mxu1 }
 0x131   : > { %v981_v37 = vpop.f32.mrf.mxu2  ;;  %v955_v58 = vadd.f32 %v954_v45, %v926_v55 }
 0x132   : > { %v982_v52 = vadd.f32 %v981_v37, %v953_v50 }
 0x133   : > { %v930_v23 = vpop.f32.mrf.mxu0 }
 0x134   : > { %v931_v12 = vadd.f32 %v4485_v29, %v930_v23 }
 0x135   : > { %v1010_v41 = vpop.f32.mrf.mxu3 }
 0x136   : > { %v1011_v53 = vadd.f32 %v1010_v41, %v982_v52  ;;  %v361_v52 = vld [vmem:[%s4306_s23 + $0x12] sm:$0xff] }
 0x138   : > { %v957_v57 = vpop.f32.mrf.mxu1 }
 0x139   : > { %v983_v49 = vpop.f32.mrf.mxu2  ;;  %v958_v3 = vadd.f32 %v957_v57, %v929_v1 }
 0x13a   : > { %v984_v60 = vadd.f32 %v983_v49, %v955_v58 }
 0x13b   : > { %v933_v27 = vpop.f32.mrf.mxu0 }
 0x13c   : > { %v934_v19 = vadd.f32 %v4485_v29, %v933_v27 }
 0x13d   : > { %v1012_v51 = vpop.f32.mrf.mxu3 }
 0x13e   : > { %v1013_v62 = vadd.f32 %v1012_v51, %v984_v60 }
 0x140   : > { %v959_v4 = vpop.f32.mrf.mxu1 }
 0x141   : > { %v986_v59 = vpop.f32.mrf.mxu2  ;;  %v960_v14 = vadd.f32 %v959_v4, %v931_v12 }
 0x142   : > { %v987_v5 = vadd.f32 %v986_v59, %v958_v3 }
 0x143   : > { %v4487_v31 = vpop.f32.mrf.mxu0 }
 0x144   : > { %v936_v26 = vadd.f32 %v4485_v29, %v4487_v31 }
 0x145   : > { %v1015_v61 = vpop.f32.mrf.mxu3 }
 0x146   : > { %v1016_v7 = vadd.f32 %v1015_v61, %v987_v5 }
 0x148   : > { %v962_v17 = vpop.f32.mrf.mxu1 }
 0x149   : > { %v988_v6 = vpop.f32.mrf.mxu2  ;;  %v963_v21 = vadd.f32 %v962_v17, %v934_v19  ;;  %v362_v19 = vld [vmem:[%s4306_s23 + $0x1a] sm:$0xff] }
 0x14a   : > { %v989_v15 = vadd.f32 %v988_v6, %v960_v14 }
 0x14b   : > { %v1034_v38 = vpop.f32.mrf.mxu0 }
 0x14c   : > { %v4491_v40 = vadd.f32 %v1034_v38, %v1006_v36 }
 0x14d   : > { %v1017_v8 = vpop.f32.mrf.mxu3 }
 0x14e   : > { %1054 = vadd.xlane.f32.xlu2 %v4491_v40  ;;  %v1018_v18 = vadd.f32 %v1017_v8, %v989_v15 }
 0x150   : > { %v964_v25 = vpop.f32.mrf.mxu1 }
 0x151   : > { %v991_v0 = vpop.f32.mrf.mxu2  ;;  %v965_v30 = vadd.f32 %v964_v25, %v936_v26  ;;  %v4011_v26 = vld [vmem:[%s5290_s2 + $0x168] sm:$0xff] }
 0x152   : > { %v992_v22 = vadd.f32 %v991_v0, %v963_v21  ;;  %v4013_v21 = vld [vmem:[%s5290_s2 + $0x178] sm:$0xff] }
 0x153   : > { %v1036_v46 = vpop.f32.mrf.mxu0  ;;  %1825 = vmatpush.bf16.msrb.mxu1 %v4013_v21 }
 0x154   : > { %v4495_v48 = vadd.f32 %v1036_v46, %v1008_v44 }
 0x155   : > { %v1020_v20 = vpop.f32.mrf.mxu3 }
 0x156   : > { %1056 = vadd.xlane.f32.xlu0 %v4495_v48  ;;  %v1021_v24 = vadd.f32 %v1020_v20, %v992_v22  ;;  %v363_v20 = vld [vmem:[%s4306_s23 + $0x22] sm:$0xff]  ;;  %v365_v22 = vld [vmem:[%s4306_s23 + $0x32] sm:$0xff] }
 0x159   : > { %v993_v10 = vpop.f32.mrf.mxu2 }
 0x15a   : > { %v994_v33 = vadd.f32 %v993_v10, %v965_v30  ;;  %v4010_v10 = vld [vmem:[%s5290_s2 + $0x160] sm:$0xff] }
 0x15b   : > { %v1039_v54 = vpop.f32.mrf.mxu0 }
 0x15c   : > { %v4499_v56 = vadd.f32 %v1039_v54, %v1011_v53  ;;  %v360_v53 = vld [vmem:[%s4306_s23 + $0xa] sm:$0xff] }
 0x15d   : > { %v1022_v32 = vpop.f32.mrf.mxu3 }
 0x15e   : > { %1058 = vadd.xlane.f32.xlu1 %v4499_v56  ;;  %v1023_v34 = vadd.f32 %v1022_v32, %v994_v33  ;;  %v4009_v33 = vld [vmem:[%s5290_s2 + $0x158] sm:$0xff] }
 0x163   : > { %v1041_v63 = vpop.f32.mrf.mxu0 }
 0x164   : > { %v4503_v2 = vadd.f32 %v1041_v63, %v1013_v62 }
 0x166   : > { %1060 = vadd.xlane.f32.xlu2 %v4503_v2 }
 0x16b   : > { %v1044_v9 = vpop.f32.mrf.mxu0 }
 0x16c   : > { %v4507_v13 = vadd.f32 %v1044_v9, %v1016_v7 }
 0x16e   : > { %1062 = vadd.xlane.f32.xlu2 %v4507_v13 }
 0x173   : > { %v1046_v16 = vpop.f32.mrf.mxu0 }
 0x174   : > { %v1047_v11 = vadd.f32 %v1046_v16, %v1018_v18  ;;  %v364_v16 = vld [vmem:[%s4306_s23 + $0x2a] sm:$0xff] }
 0x176   : > { %1064 = vadd.xlane.f32.xlu0 %v1047_v11 }
 0x17b   : > { %v1049_v23 = vpop.f32.mrf.mxu0 }
 0x17c   : > { %v1050_v28 = vadd.f32 %v1049_v23, %v1021_v24  ;;  %v4012_v24 = vld [vmem:[%s5290_s2 + $0x170] sm:$0xff] }
 0x17d   : > { %1826 = vmatpush.bf16.msrb.mxu1 %v4012_v24 }
 0x17e   : > { %1066 = vadd.xlane.f32.xlu1 %v1050_v28 }
 0x181   : > { %1827 = vmatpush.bf16.msrb.mxu1 %v4011_v26 }
 0x183   : > { %v1051_v35 = vpop.f32.mrf.mxu0 }
 0x184   : > { %v1052_v27 = vadd.f32 %v1051_v35, %v1023_v34 }
 0x185   : > { %1828 = vmatpush.bf16.msrb.mxu1 %v4010_v10 }
 0x186   : > { %v1069_v36 = vsel %vm1068_vm4, %v1052_v27, 0.0 }
 0x187   : > { %1070 = vadd.xlane.f32.xlu2 %v1069_v36 }
 0x189   : > { %1829 = vmatpush.bf16.msrb.mxu1 %v4009_v33 }
 0x1c1   : > { %v1055_v37 = vpop.xlane.xlu2 %1054 }
 0x1c2   : > { %v1072_v38 = vmul.f32 0.010416667, %v1055_v37  ;;  %v4008_v37 = vld [vmem:[%s5290_s2 + $0x150] sm:$0xff] }
 0x1c3   : > { %1830 = vmatpush.bf16.msrb.mxu1 %v4008_v37 }
 0x1c4   : > { %v1080_v29 = vsub.f32 %v4491_v40, %v1072_v38 }
 0x1c6   : > { %v4518_v31 = vmul.f32 %v4160_v39, %v1080_v29 }
 0x1c8   : > { %v1099_v41 = vmul.f32 %v4518_v31, %v4518_v31 }
 0x1c9   : > { %v1057_v42 = vpop.xlane.xlu0 %1056 }
 0x1ca   : > { %v1073_v43 = vmul.f32 0.010416667, %v1057_v42  ;;  %1107 = vadd.xlane.f32.xlu0 %v1099_v41  ;;  %v4007_v42 = vld [vmem:[%s5290_s2 + $0x148] sm:$0xff] }
 0x1cb   : > { %1831 = vmatpush.bf16.msrb.mxu1 %v4007_v42  ;;  %v4027_v42 = vld [vmem:[%s5290_s2 + $0x1e8] sm:$0xff] }
 0x1cc   : > { %v1081_v44 = vsub.f32 %v4495_v48, %v1073_v43  ;;  %v359_v48 = vld [vmem:[%s4306_s23 + $0x2] sm:$0xff] }
 0x1ce   : > { %v4523_v45 = vmul.f32 %v4160_v39, %v1081_v44 }
 0x1d0   : > { %v1100_v46 = vmul.f32 %v4523_v45, %v4523_v45 }
 0x1d1   : > { %v1059_v47 = vpop.xlane.xlu1 %1058 }
 0x1d2   : > { %v1074_v40 = vmul.f32 0.010416667, %v1059_v47  ;;  %1109 = vadd.xlane.f32.xlu1 %v1100_v46 }
 0x1d4   : > { %v1082_v49 = vsub.f32 %v4499_v56, %v1074_v40  ;;  %v4587_v40 = vld [vmem:[%s5292_s4] ss:$0 sm:$0xff] }
 0x1d6   : > { %v4528_v50 = vmul.f32 %v4160_v39, %v1082_v49 }
 0x1d8   : > { %v1101_v51 = vmul.f32 %v4528_v50, %v4528_v50 }
 0x1d9   : > { %v1061_v54 = vpop.xlane.xlu2 %1060 }
 0x1da   : > { %1111 = vadd.xlane.f32.xlu2 %v1101_v51  ;;  %v1075_v55 = vmul.f32 0.010416667, %v1061_v54 }
 0x1dc   : > { %v1083_v57 = vsub.f32 %v4503_v2, %v1075_v55 }
 0x1de   : > { %1272 = vperm.xlu0 %4156, %v361_v52   ;;  %v4536_v56 = vmul.f32 %v4160_v39, %v1083_v57  ;;  %v4006_v52 = vld [vmem:[%s5290_s2 + $0x140] sm:$0xff] }
 0x1df   : > { %1832 = vmatpush.bf16.msrb.mxu1 %v4006_v52 }
 0x1e0   : > { %v1102_v62 = vmul.f32 %v4536_v56, %v4536_v56 }
 0x1e1   : > { %v1063_v58 = vpop.xlane.xlu2 %1062 }
 0x1e2   : > { %v1076_v63 = vmul.f32 0.010416667, %v1063_v58 }
 0x1e4   : > { %v1084_v2 = vsub.f32 %v4507_v13, %v1076_v63 }
 0x1e6   : > { %v4545_v12 = vmul.f32 %v4160_v39, %v1084_v2 }
 0x1e8   : > { %v1103_v17 = vmul.f32 %v4545_v12, %v4545_v12 }
 0x1e9   : > { %v1065_v59 = vpop.xlane.xlu0 %1064 }
 0x1ea   : > { %v1077_v60 = vmul.f32 0.010416667, %v1065_v59 }
 0x1eb   : > { %1267 = vperm.xlu1 %4157, %v360_v53  }
 0x1ec   : > { %v1085_v61 = vsub.f32 %v1047_v11, %v1077_v60  ;;  %v366_v11 = vld [vmem:[%s4306_s23 + $0x3a] sm:$0xf] }
 0x1ee   : > { %v4540_v6 = vmul.f32 %v4160_v39, %v1085_v61 }
 0x1f0   : > { %v1104_v9 = vmul.f32 %v4540_v6, %v4540_v6 }
 0x1f1   : > { %v1067_v1 = vpop.xlane.xlu1 %1066 }
 0x1f2   : > { %1262 = vperm.xlu2 %4158, %v359_v48   ;;  %v1078_v4 = vmul.f32 0.010416667, %v1067_v1  ;;  %v4596_v48 = vld [vmem:[%s5293_s5] ss:$0 sm:$0xff] }
 0x1f4   : > { %v1086_v7 = vsub.f32 %v1050_v28, %v1078_v4 }
 0x1f6   : > { %v4547_v14 = vmul.f32 %v4160_v39, %v1086_v7 }
 0x1f8   : > { %v1105_v13 = vmul.f32 %v4547_v14, %v4547_v14 }
 0x1fa   : > { %v1071_v3 = vpop.xlane.xlu2 %1070 }
 0x1fb   : > { %v1079_v5 = vmul.f32 0.010416667, %v1071_v3 }
 0x1fd   : > { %v1087_v8 = vsub.f32 %v1052_v27, %v1079_v5 }
 0x1ff   : > { %v4549_v15 = vmul.f32 %v4160_v39, %v1087_v8 }
 0x201   : > { %v1106_v18 = vmul.f32 %v4549_v15, %v4549_v15 }
 0x203   : > { %v1121_v0 = vsel %vm1068_vm4, %v1106_v18, 0.0 }
 0x208   : > { %1113 = vadd.xlane.f32.xlu0 %v1102_v62 }
 0x210   : > { %1117 = vadd.xlane.f32.xlu0 %v1104_v9 }
 0x215   : > { %1115 = vadd.xlane.f32.xlu1 %v1103_v17 }
 0x218   : > { %1119 = vadd.xlane.f32.xlu0 %v1105_v13 }
 0x21b   : > { %1122 = vadd.xlane.f32.xlu2 %v1121_v0 }
 0x22c   : > { %1287 = vperm.xlu0 %4156, %v364_v16  }
 0x22e   : > { %1277 = vperm.xlu1 %4157, %v362_v19  }
 0x234   : > { %1297 = vperm.xlu0 %4156, %v366_v11  }
 0x236   : > { %1282 = vperm.xlu1 %4157, %v363_v20  }
 0x23d   : > { %v1108_v25 = vpop.xlane.xlu0 %1107 }
 0x23e   : > { %v1124_v23 = vmul.f32 0.010416667, %v1108_v25  ;;  %1292 = vperm.xlu1 %4157, %v365_v22  }
 0x240   : > { %v1132_v28 = vadd.f32 0.0001, %v1124_v23 }
 0x242   : > { %4170 = vrsqrt.f32 %v1132_v28  ;;  %vm1146_vm6 = vweird.f32 %v1132_v28 }
 0x245   : > { %v1110_v30 = vpop.xlane.xlu1 %1109 }
 0x246   : > { %v1125_v32 = vmul.f32 0.010416667, %v1110_v30 }
 0x248   : > { %v4171_v34 = vpop.eup %4170  ;;  %v1133_v35 = vadd.f32 0.0001, %v1125_v32 }
 0x249   : > { %v1141_v27 = vmul.f32 %v4171_v34, %v1132_v28  ;;  %vm1147_vm5 = vweird.f32 %v4171_v34 }
 0x24a   : > { %4172 = vrsqrt.f32 %v1133_v35  ;;  %vm1148_vm7 = vmor %vm1146_vm6, %vm1147_vm5  ;;  %vm1156_vm9 = vweird.f32 %v1133_v35 }
 0x24b   : > { %v1142_v36 = vmul.f32 %v4171_v34, %v1141_v27  ;;  %vm4611_vm5 = vmor %vm1324_vm14, %vm1325_vm15  ;;  %v4021_v27 = vld [vmem:[%s5290_s2 + $0x1b8] sm:$0xff] }
 0x24c   : > { %1854 = vmatpush.bf16.msrb.mxu2 %v4021_v27  ;;  %v4031_v27 = vld [vmem:[%s5290_s2 + $0x208] sm:$0xff] }
 0x24d   : > { %v1143_v38 = vmul.f32 0.5, %v1142_v36  ;;  %v1112_v39 = vpop.xlane.xlu2 %1111 }
 0x24e   : > { %v1126_v29 = vmul.f32 0.010416667, %v1112_v39  ;;  %v4037_v39 = vld [vmem:[%s5290_s2 + $0x238] sm:$0xff] }
 0x24f   : > { %v1144_v41 = vsub.f32 1.5, %v1143_v38  ;;  %v4028_v38 = vld [vmem:[%s5290_s2 + $0x1f0] sm:$0xff]  ;;  %1912 = vmatpush.bf16.msra.mxu0 %v4037_v39 }
 0x250   : > { %v4173_v43 = vpop.eup %4172  ;;  %v1134_v44 = vadd.f32 0.0001, %v1126_v29 }
 0x251   : > { %v1145_v46 = vmul.f32 %v4171_v34, %v1144_v41  ;;  %v1151_v47 = vmul.f32 %v4173_v43, %v1133_v35  ;;  %vm1157_vm8 = vweird.f32 %v4173_v43  ;;  %v4029_v35 = vld [vmem:[%s5290_s2 + $0x1f8] sm:$0xff]  ;;  %v4020_v41 = vld [vmem:[%s5290_s2 + $0x1b0] sm:$0xff] }
 0x252   : > { %4174 = vrsqrt.f32 %v1134_v44  ;;  %vm1158_vm10 = vmor %vm1156_vm9, %vm1157_vm8  ;;  %vm1166_vm12 = vweird.f32 %v1134_v44  ;;  %1883 = vmatpush.bf16.msrb.mxu3 %v4029_v35  ;;  %1855 = vmatpush.bf16.msrb.mxu2 %v4020_v41  ;;  %v4022_v35 = vld [vmem:[%s5290_s2 + $0x1c0] sm:$0xff] }
 0x253   : > { %v1149_v49 = vsel %vm1148_vm7, %v4171_v34, %v1145_v46  ;;  %v1152_v51 = vmul.f32 %v4173_v43, %v1151_v47 }
 0x254   : > { %v1220_v53 = vmul.f32 %v1149_v49, %v4518_v31  ;;  %v4026_v49 = vld [vmem:[%s5290_s2 + $0x1e0] sm:$0xff] }
 0x255   : > { %v1153_v54 = vmul.f32 0.5, %v1152_v51  ;;  %v4600_v1 = vpop.permute.xlu2 %1262  ;;  %v4035_v51 = vld [vmem:[%s5290_s2 + $0x228] sm:$0xff] }
 0x256   : > { %v1232_v55 = vmul.f32 %v4587_v40, %v1220_v53  ;;  %1884 = vmatpush.bf16.msrb.mxu3 %v4028_v38  ;;  %v4014_v38 = vld [vmem:[%s5290_s2 + $0x180] sm:$0xff] }
 0x257   : > { %v1154_v57 = vsub.f32 1.5, %v1153_v54  ;;  %v4018_v54 = vld [vmem:[%s5290_s2 + $0x1a0] sm:$0xff] }
 0x258   : > { %v4175_v58 = vpop.eup %4174  ;;  %v1244_v59 = vadd.f32 %v4596_v48, %v1232_v55 }
 0x259   : > { %v1155_v60 = vmul.f32 %v4173_v43, %v1154_v57  ;;  %v1161_v61 = vmul.f32 %v4175_v58, %v1134_v44  ;;  %vm1167_vm11 = vweird.f32 %v4175_v58  ;;  %v4019_v44 = vld [vmem:[%s5290_s2 + $0x1a8] sm:$0xff] }
 0x25a   : > { %v1252_v62 = vmax.f32 %v1244_v59, 0.0  ;;  %vm1168_vm13 = vmor %vm1166_vm12, %vm1167_vm11  ;;  %1885 = vmatpush.bf16.msrb.mxu3 %v4027_v42  ;;  %1856 = vmatpush.bf16.msrb.mxu2 %v4019_v44  ;;  %v4025_v59 = vld [vmem:[%s5290_s2 + $0x1d8] sm:$0xff] }
 0x25b   : > { %v1159_v31 = vsel %vm1158_vm10, %v4173_v43, %v1155_v60  ;;  %v1162_v63 = vmul.f32 %v4175_v58, %v1161_v61  ;;  %v4036_v43 = vld [vmem:[%s5290_s2 + $0x230] sm:$0xff] }
 0x25c   : > { %v1221_v3 = vmul.f32 %v1159_v31, %v4523_v45  ;;  %v1300_v4 = vmul.f32 %v4600_v1, %v1252_v62  ;;  %1913 = vmatpush.bf16.msra.mxu0 %v4036_v43  ;;  %v4034_v62 = vld [vmem:[%s5290_s2 + $0x220] sm:$0xff]  ;;  %v4017_v31 = vld [vmem:[%s5290_s2 + $0x198] sm:$0xff] }
 0x25d   : > { %v1163_v5 = vmul.f32 0.5, %v1162_v63  ;;  %v4606_v16 = vpop.permute.xlu1 %1267  ;;  %v4030_v43 = vld [vmem:[%s5290_s2 + $0x200] sm:$0xff] }
 0x25e   : > { %v1308_v2 = vpack.c.bf16 %v1300_v4, %v1300_v4  ;;  %v1233_v7 = vmul.f32 %v4587_v40, %v1221_v3  ;;  %1886 = vmatpush.bf16.msrb.mxu3 %v4026_v49  ;;  %1857 = vmatpush.bf16.msrb.mxu2 %v4018_v54 }
 0x25f   : > { %v1164_v8 = vsub.f32 1.5, %v1163_v5 }
 0x260   : > { %v1327_v9 = vrot.slane %v1308_v2, 7  ;;  %v1245_v17 = vadd.f32 %v4596_v48, %v1233_v7  ;;  %1914 = vmatpush.bf16.msra.mxu0 %v4035_v51  ;;  %v4024_v2 = vld [vmem:[%s5290_s2 + $0x1d0] sm:$0xff]  ;;  %v4033_v7 = vld [vmem:[%s5290_s2 + $0x218] sm:$0xff] }
 0x261   : > { %v1165_v13 = vmul.f32 %v4175_v58, %v1164_v8 }
 0x262   : > { %1357 = vst [vmem:[#allocation2] sm:$0xe] %v1327_v9  ;;  %v1253_v18 = vmax.f32 %v1245_v17, 0.0  ;;  %v1328_v24 = vrot.slane %v1327_v9, 4  ;;  %1887 = vmatpush.bf16.msrb.mxu3 %v4025_v59  ;;  %1858 = vmatpush.bf16.msrb.mxu2 %v4017_v31 }
 0x263   : > { %v1169_v0 = vsel %vm1168_vm13, %v4175_v58, %v1165_v13  ;;  %v4045_v58 = vld [vmem:[%s5290_s2 + $0x278] sm:$0xff] }
 0x264   : > { %v1222_v45 = vmul.f32 %v1169_v0, %v4528_v50  ;;  %v1301_v19 = vmul.f32 %v4606_v16, %v1253_v18  ;;  %v4618_v50 = vpop.permute.xlu0 %1272  ;;  %1941 = vmatpush.bf16.msra.mxu1 %v4045_v58  ;;  %1915 = vmatpush.bf16.msra.mxu0 %v4034_v62  ;;  %v4016_v18 = vld [vmem:[%s5290_s2 + $0x190] sm:$0xff] }
 0x266   : > { %v1234_v11 = vmul.f32 %v4587_v40, %v1222_v45  ;;  %v1309_v20 = vpack.c.bf16 %v1301_v19, %v1301_v19  ;;  %1888 = vmatpush.bf16.msrb.mxu3 %v4024_v2  ;;  %1859 = vmatpush.bf16.msrb.mxu2 %v4016_v18 }
 0x268   : > { %v1246_v22 = vadd.f32 %v4596_v48, %v1234_v11  ;;  %v1329_v25 = vrot.slane %v1309_v20, 7  ;;  %1916 = vmatpush.bf16.msra.mxu0 %v4033_v7  ;;  %v4023_v11 = vld [vmem:[%s5290_s2 + $0x1c8] sm:$0xff]  ;;  %v4032_v20 = vld [vmem:[%s5290_s2 + $0x210] sm:$0xff] }
 0x26a   : > { %v1254_v23 = vmax.f32 %v1246_v22, 0.0  ;;  %v1330_v26 = vsel %vm4611_vm5, %v1328_v24, %v1329_v25  ;;  %v1331_v32 = vrot.slane %v1329_v25, 4  ;;  %1889 = vmatpush.bf16.msrb.mxu3 %v4023_v11 }
 0x26b   : > { %1358 = vst [vmem:[#allocation2 + $0x4] sm:$0xf] %v1330_v26  ;;  %v4015_v26 = vld [vmem:[%s5290_s2 + $0x188] sm:$0xff] }
 0x26c   : > { %v1302_v28 = vmul.f32 %v4618_v50, %v1254_v23  ;;  %v4044_v23 = vld [vmem:[%s5290_s2 + $0x270] sm:$0xff]  ;;  %1917 = vmatpush.bf16.msra.mxu0 %v4032_v20  ;;  %1860 = vmatpush.bf16.msrb.mxu2 %v4015_v26 }
 0x26d   : > { %1942 = vmatpush.bf16.msra.mxu1 %v4044_v23  ;;  %v1374_v23 = vld [vmem:[#allocation2] sm:$0xe] }
 0x26e   : > { %v1310_v10 = vpack.c.bf16 %v1302_v28, %v1302_v28  ;;  %1890 = vmatpush.bf16.msrb.mxu3 %v4022_v35 }
 0x270   : > { %v4621_v30 = vrot.slane %v1310_v10, 7  ;;  %1918 = vmatpush.bf16.msra.mxu0 %v4031_v27  ;;  %1861 = vmatpush.bf16.msrb.mxu2 %v4014_v38  ;;  %v4040_v27 = vld [vmem:[%s5290_s2 + $0x250] sm:$0xff] }
 0x272   : > { %v1333_v33 = vsel %vm4611_vm5, %v1331_v32, %v4621_v30  ;;  %v4626_v34 = vld [vmem:[#allocation2] sm:$0xff]   ;;  %v1334_v20 = vrot.slane %v4621_v30, 4  ;;  %v1440_v30 = vunpack.c.l.b16 %v1374_v23 }
 0x273   : > { %1359 = vst [vmem:[#allocation2 + $0x8] sm:$0xf] %v1333_v33  ;;  %1833 = vmatmul.bf16.vlgmr.msrb.gmra.mxu1 %v4626_v34 }
 0x274   : > { %1919 = vmatpush.bf16.msra.mxu0 %v4030_v43 }
 0x27b   : > { %v1114_v36 = vpop.xlane.xlu0 %1113 }
 0x27c   : > { %v1127_v37 = vmul.f32 0.010416667, %v1114_v36 }
 0x27e   : > { %v1135_v29 = vadd.f32 0.0001, %v1127_v37 }
 0x280   : > { %4176 = vrsqrt.f32 %v1135_v29  ;;  %vm1176_vm7 = vweird.f32 %v1135_v29 }
 0x283   : > { %v1118_v46 = vpop.xlane.xlu0 %1117 }
 0x284   : > { %v1129_v47 = vmul.f32 0.010416667, %v1118_v46 }
 0x286   : > { %v4177_v52 = vpop.eup %4176  ;;  %v4659_v53 = vadd.f32 0.0001, %v1129_v47 }
 0x287   : > { %v1171_v55 = vmul.f32 %v4177_v52, %v1135_v29  ;;  %vm1177_vm6 = vweird.f32 %v4177_v52 }
 0x288   : > { %4178 = vrsqrt.f32 %v4659_v53  ;;  %v1116_v57 = vpop.xlane.xlu1 %1115  ;;  %vm1178_vm8 = vmor %vm1176_vm7, %vm1177_vm6  ;;  %vm1196_vm10 = vweird.f32 %v4659_v53 }
 0x289   : > { %v1172_v60 = vmul.f32 %v4177_v52, %v1171_v55  ;;  %v1128_v61 = vmul.f32 0.010416667, %v1116_v57 }
 0x28b   : > { %v1173_v63 = vmul.f32 0.5, %v1172_v60  ;;  %v4677_v3 = vadd.f32 0.0001, %v1128_v61  ;;  %v1120_v4 = vpop.xlane.xlu0 %1119 }
 0x28c   : > { %v1130_v5 = vmul.f32 0.010416667, %v1120_v4 }
 0x28d   : > { %v1174_v8 = vsub.f32 1.5, %v1173_v63  ;;  %4180 = vrsqrt.f32 %v4677_v3  ;;  %vm1186_vm13 = vweird.f32 %v4677_v3 }
 0x28e   : > { %v4179_v9 = vpop.eup %4178  ;;  %v4686_v17 = vadd.f32 0.0001, %v1130_v5  ;;  %v1123_v13 = vpop.xlane.xlu2 %1122 }
 0x28f   : > { %v1175_v0 = vmul.f32 %v4177_v52, %v1174_v8  ;;  %v1191_v45 = vmul.f32 %v4179_v9, %v4659_v53  ;;  %v1131_v19 = vmul.f32 0.010416667, %v1123_v13  ;;  %vm1197_vm9 = vweird.f32 %v4179_v9  ;;  %v4043_v53 = vld [vmem:[%s5290_s2 + $0x268] sm:$0xff]  ;;  %v4041_v13 = vld [vmem:[%s5290_s2 + $0x258] sm:$0xff] }
 0x290   : > { %4182 = vrsqrt.f32 %v4686_v17  ;;  %vm1198_vm11 = vmor %vm1196_vm10, %vm1197_vm9  ;;  %1943 = vmatpush.bf16.msra.mxu1 %v4043_v53  ;;  %vm1206_vm6 = vweird.f32 %v4686_v17 }
 0x291   : > { %v1179_v22 = vsel %vm1178_vm8, %v4177_v52, %v1175_v0  ;;  %v1192_v24 = vmul.f32 %v4179_v9, %v1191_v45  ;;  %v4699_v25 = vadd.f32 0.0001, %v1131_v19 }
 0x292   : > { %v1223_v10 = vmul.f32 %v1179_v22, %v4536_v56 }
 0x293   : > { %v4181_v28 = vpop.eup %4180  ;;  %v1193_v32 = vmul.f32 0.5, %v1192_v24  ;;  %4184 = vrsqrt.f32 %v4699_v25  ;;  %vm1216_vm9 = vweird.f32 %v4699_v25 }
 0x294   : > { %v1181_v33 = vmul.f32 %v4181_v28, %v4677_v3  ;;  %v1235_v41 = vmul.f32 %v4587_v40, %v1223_v10  ;;  %vm1187_vm12 = vweird.f32 %v4181_v28 }
 0x295   : > { %v1194_v36 = vsub.f32 1.5, %v1193_v32  ;;  %vm1188_vm14 = vmor %vm1186_vm13, %vm1187_vm12 }
 0x296   : > { %v4183_v37 = vpop.eup %4182  ;;  %v1182_v56 = vmul.f32 %v4181_v28, %v1181_v33  ;;  %v1247_v55 = vadd.f32 %v4596_v48, %v1235_v41 }
 0x297   : > { %v1195_v39 = vmul.f32 %v4179_v9, %v1194_v36  ;;  %v1201_v29 = vmul.f32 %v4183_v37, %v4686_v17  ;;  %vm1207_vm15 = vweird.f32 %v4183_v37 }
 0x298   : > { %v1183_v42 = vmul.f32 0.5, %v1182_v56  ;;  %v1255_v3 = vmax.f32 %v1247_v55, 0.0  ;;  %vm1208_vm7 = vmor %vm1206_vm6, %vm1207_vm15 }
 0x299   : > { %v4185_v44 = vpop.eup %4184  ;;  %v1199_v46 = vsel %vm1198_vm11, %v4179_v9, %v1195_v39  ;;  %v1202_v47 = vmul.f32 %v4183_v37, %v1201_v29  ;;  %v1407_v39 = vshll.u32 %v4626_v34, 16 }
 0x29a   : > { %v1225_v49 = vmul.f32 %v1199_v46, %v4540_v6  ;;  %v1184_v51 = vsub.f32 1.5, %v1183_v42  ;;  %v1211_v52 = vmul.f32 %v4185_v44, %v4699_v25  ;;  %v4042_v6 = vld [vmem:[%s5290_s2 + $0x260] sm:$0xff]  ;;  %vm1217_vm8 = vweird.f32 %v4185_v44 }
 0x29b   : > { %v1203_v54 = vmul.f32 0.5, %v1202_v47  ;;  %1944 = vmatpush.bf16.msra.mxu1 %v4042_v6  ;;  %vm1218_vm10 = vmor %vm1216_vm9, %vm1217_vm8  ;;  %v4127_v25 = vunpack.c.h.b16 %v4626_v34  ;;  %v1409_v55 = vrot.slane %v1407_v39, 1 }
 0x29c   : > { %v1185_v57 = vmul.f32 %v4181_v28, %v1184_v51  ;;  %v1212_v58 = vmul.f32 %v4185_v44, %v1211_v52  ;;  %v1237_v59 = vmul.f32 %v4587_v40, %v1225_v49 }
 0x29d   : > { %v1204_v60 = vsub.f32 1.5, %v1203_v54  ;;  %v1405_v54 = vshrl.u32 %v4626_v34, 16 }
 0x29e   : > { %v1189_v61 = vsel %vm1188_vm14, %v4181_v28, %v1185_v57  ;;  %v1213_v62 = vmul.f32 0.5, %v1212_v58  ;;  %v1249_v31 = vadd.f32 %v4596_v48, %v1237_v59  ;;  %v4749_v11 = vpop.permute.xlu0 %1287 }
 0x29f   : > { %v1224_v63 = vmul.f32 %v1189_v61, %v4545_v12  ;;  %v1205_v4 = vmul.f32 %v4183_v37, %v1204_v60  ;;  %1945 = vmatpush.bf16.msra.mxu1 %v4041_v13  ;;  %v4039_v60 = vld [vmem:[%s5290_s2 + $0x248] sm:$0xff] }
 0x2a0   : > { %v1214_v5 = vsub.f32 1.5, %v1213_v62  ;;  %v4739_v2 = vpop.permute.xlu1 %1277  ;;  %v1257_v17 = vmax.f32 %v1249_v31, 0.0 }
 0x2a1   : > { %v1209_v7 = vsel %vm1208_vm7, %v4183_v37, %v1205_v4  ;;  %v1303_v8 = vmul.f32 %v4739_v2, %v1255_v3  ;;  %v1236_v9 = vmul.f32 %v4587_v40, %v1224_v63  ;;  %v1441_v37 = vpack.c.b16 %v4127_v25, %v1440_v30 }
 0x2a2   : > { %v1215_v12 = vmul.f32 %v4185_v44, %v1214_v5  ;;  %v1226_v18 = vmul.f32 %v1209_v7, %v4547_v14  ;;  %v1305_v26 = vmul.f32 %v4749_v11, %v1257_v17  ;;  %v1410_v7 = vor.u32 %v1409_v55, %v1405_v54 }
 0x2a3   : > { %v1311_v0 = vpack.c.bf16 %v1303_v8, %v1303_v8  ;;  %v1248_v45 = vadd.f32 %v4596_v48, %v1236_v9  ;;  %1946 = vmatpush.bf16.msra.mxu1 %v4040_v27  ;;  %v1460_v46 = vshll.u32 %v1441_v37, 16  ;;  %v1442_v59 = vrot.slane %v1441_v37, 1 }
 0x2a4   : > { %v1219_v19 = vsel %vm1218_vm10, %v4185_v44, %v1215_v12  ;;  %v1238_v32 = vmul.f32 %v4587_v40, %v1226_v18  ;;  %v1313_v36 = vpack.c.bf16 %v1305_v26, %v1305_v26  ;;  %v1457_v44 = vshrl.u32 %v1441_v37, 16 }
 0x2a5   : > { %v1227_v22 = vmul.f32 %v1219_v19, %v4549_v15  ;;  %v1335_v24 = vrot.slane %v1311_v0, 7  ;;  %v1256_v10 = vmax.f32 %v1248_v45, 0.0  ;;  %v1462_v63 = vrot.slane %v1460_v46, 2 }
 0x2a6   : > { %v1341_v42 = vrot.slane %v1313_v36, 7  ;;  %v4770_v43 = vpop.permute.xlu0 %1297  ;;  %v1459_v31 = vrot.slane %v1457_v44, 1 }
 0x2a7   : > { %v1336_v14 = vsel %vm4611_vm5, %v1334_v20, %v1335_v24  ;;  %v1239_v28 = vmul.f32 %v4587_v40, %v1227_v22  ;;  %v1250_v40 = vadd.f32 %v4596_v48, %v1238_v32  ;;  %v1337_v29 = vrot.slane %v1335_v24, 4  ;;  %1947 = vmatpush.bf16.msra.mxu1 %v4039_v60 }
 0x2a8   : > { %1360 = vst [vmem:[#allocation2 + $0xc] sm:$0xf] %v1336_v14  ;;  %v4759_v33 = vpop.permute.xlu1 %1282  ;;  %v1343_v12 = vrot.slane %v1341_v42, 4  ;;  %v1463_v0 = vor.u32 %v1462_v63, %v1459_v31  ;;  %v4038_v14 = vld [vmem:[%s5290_s2 + $0x240] sm:$0xff] }
 0x2a9   : > { %v1251_v15 = vadd.f32 %v4596_v48, %v1239_v28  ;;  %v1304_v35 = vmul.f32 %v4759_v33, %v1256_v10  ;;  %v1258_v52 = vmax.f32 %v1250_v40, 0.0 }
 0x2ab   : > { %v1259_v56 = vmax.f32 %v1251_v15, 0.0  ;;  %v1312_v38 = vpack.c.bf16 %v1304_v35, %v1304_v35  ;;  %1948 = vmatpush.bf16.msra.mxu1 %v4038_v14 }
 0x2ad   : > { %v1338_v41 = vrot.slane %v1312_v38, 7  ;;  %v1307_v47 = vmul.f32 %v4770_v43, %v1259_v56 }
 0x2af   : > { %v1339_v49 = vsel %vm4611_vm5, %v1337_v29, %v1338_v41  ;;  %v1340_v51 = vrot.slane %v1338_v41, 4  ;;  %v4775_v53 = vld [vmem:[#allocation2 + $0x8] sm:$0xff]  ;;  %v1315_v4 = vpack.c.bf16 %v1307_v47, %v1307_v47 }
 0x2b0   : > { %1361 = vst [vmem:[#allocation2 + $0x10] sm:$0xf] %v1339_v49  ;;  %v4777_v48 = vpop.permute.xlu1 %1292  ;;  %1838 = vmatmul.bf16.gmra.mxu1 %v4775_v53  ;;  %v1443_v6 = vrot.slane %v4775_v53, 1  ;;  %v1412_v61 = vshll.u32 %v4775_v53, 16  ;;  %v1416_v62 = vshrl.u32 %v4775_v53, 16 }
 0x2b1   : > { %v1342_v57 = vsel %vm4611_vm5, %v1340_v51, %v1341_v42  ;;  %v1306_v58 = vmul.f32 %v4777_v48, %v1258_v52  ;;  %v1347_v19 = vrot.slane %v1315_v4, 7 }
 0x2b2   : > { %1362 = vst [vmem:[#allocation2 + $0x14] sm:$0xf] %v1342_v57  ;;  %v1444_v5 = vsel %vm525_vm1, %v1442_v59, %v1443_v6  ;;  %v1414_v8 = vrot.slane %v1412_v61, 1  ;;  %v1464_v9 = vrot.slane %v1416_v62, 1  ;;  %v1465_v13 = vrot.slane %v1412_v61, 2 }
 0x2b3   : > { %v1314_v3 = vpack.c.bf16 %v1306_v58, %v1306_v58  ;;  %1891 = vmatmul.bf16.vlgmr.msrb.gmra.mxu3 %v1444_v5  ;;  %v1376_v61 = vld [vmem:[#allocation2] sm:$0xc] }
 0x2b4   : > { %v1415_v18 = vsel %vm486_vm0, %v1410_v7, %v1414_v8  ;;  %v1466_v45 = vor.u32 %v1465_v13, %v1464_v9  ;;  %v1418_v56 = vor.u32 %v1416_v62, %v1414_v8  ;;  %v1486_v63 = vunpack.c.l.b16 %v1376_v61 }
 0x2b5   : > { %v1344_v17 = vrot.slane %v1314_v3, 7  ;;  %1862 = vmatmul.bf16.vlgmr.msrb.gmra.mxu2 %v1415_v18  ;;  %v1489_v3 = vrot.slane %v4775_v53, 2 }
 0x2b6   : > { %v1467_v24 = vsel %vm540_vm2, %v1463_v0, %v1466_v45  ;;  %v1487_v4 = vpack.c.b16 %v4127_v25, %v1486_v63 }
 0x2b7   : > { %v1345_v20 = vsel %vm4611_vm5, %v1343_v12, %v1344_v17  ;;  %v1346_v22 = vrot.slane %v1344_v17, 4  ;;  %1920 = vmatmul.bf16.vlgmr.msra.gmra.mxu0 %v1467_v24 }
 0x2b8   : > { %1363 = vst [vmem:[#allocation2 + $0x18] sm:$0xf] %v1345_v20  ;;  %v1488_v5 = vrot.slane %v1487_v4, 2 }
 0x2b9   : > { %v1348_v23 = vsel %vm4611_vm5, %v1346_v22, %v1347_v19  ;;  %v4005_v26 = vld [vmem:[#allocation2 + $0x10] sm:$0xff] }
 0x2ba   : > { %1364 = vst [vmem:[#allocation2 + $0x1c] sm:$0x7] %v1348_v23  ;;  %v1420_v28 = vshll.u32 %v4005_v26, 16  ;;  %v1424_v10 = vshrl.u32 %v4005_v26, 16  ;;  %v1445_v32 = vrot.slane %v4005_v26, 1  ;;  %v1490_v7 = vsel %vm573_vm3, %v1488_v5, %v1489_v3 }
 0x2bb   : > { %v1491_v13 = vrot.slane %v4005_v26, 2 }
 0x2bc   : > { %v1468_v30 = vrot.slane %v1424_v10, 1  ;;  %v1469_v15 = vrot.slane %v1420_v28, 2  ;;  %v1422_v35 = vrot.slane %v1420_v28, 1  ;;  %v1446_v27 = vsel %vm525_vm1, %v1443_v6, %v1445_v32 }
 0x2bd   : > { %v1492_v12 = vsel %vm573_vm3, %v1489_v3, %v1491_v13 }
 0x2be   : > { %v1470_v38 = vor.u32 %v1469_v15, %v1468_v30  ;;  %v1423_v40 = vsel %vm486_vm0, %v1418_v56, %v1422_v35  ;;  %v1426_v6 = vor.u32 %v1424_v10, %v1422_v35 }
 0x2c0   : > { %1843 = vmatmul.bf16.gmra.mxu1 %v4005_v26  ;;  %v1471_v41 = vsel %vm540_vm2, %v1466_v45, %v1470_v38  ;;  %v4815_v26 = vld [vmem:[%s5291_s3 + $0x1] ss:$0 sm:$0xff] }
 0x2c1   : > { %v4144_v36 = vld [vmem:[#allocation2 + $0x18] sm:$0xff]  }
 0x2c2   : > { %v1373_v37 = vld [vmem:[#allocation2 + $0x1c] sm:$0x7]  ;;  %v4130_v39 = vunpack.c.l.b16 %v4144_v36  ;;  %v1473_v47 = vshrl.u32 %v4144_v36, 16  ;;  %v1476_v49 = vshll.u32 %v4144_v36, 16  ;;  %v1493_v17 = vrot.slane %v4144_v36, 2 }
 0x2c3   : > { %1896 = vmatmul.bf16.gmra.mxu3 %v1446_v27  ;;  %v1402_v29 = vunpack.c.l.b16 %v1373_v37  ;;  %v1372_v42 = vld [vmem:[#allocation2 + $0x1c] sm:$0x3] }
 0x2c4   : > { %v1392_v46 = vunpack.c.l.b16 %v1372_v42  ;;  %v1475_v55 = vrot.slane %v1473_v47, 1  ;;  %v1478_v57 = vrot.slane %v1476_v49, 2  ;;  %v1494_v18 = vsel %vm573_vm3, %v1491_v13, %v1493_v17 }
 0x2c5   : > { %1867 = vmatmul.bf16.gmra.mxu2 %v1423_v40  ;;  %v1403_v44 = vpack.c.b16 %v1402_v29, %v4130_v39 }
 0x2c6   : > { %v1396_v52 = vpack.c.b16 %v1392_v46, %v4130_v39  ;;  %v1479_v60 = vor.u32 %v1478_v57, %v1475_v55 }
 0x2c7   : > { %1925 = vmatmul.bf16.gmra.mxu0 %v1471_v41  ;;  %v1428_v51 = vshll.u32 %v1403_v44, 16  ;;  %v1447_v54 = vrot.slane %v1403_v44, 1  ;;  %v1432_v8 = vshrl.u32 %v1403_v44, 16 }
 0x2c8   : > { %v1480_v31 = vsel %vm540_vm2, %v1470_v38, %v1479_v60 }
 0x2c9   : > { %v1430_v58 = vrot.slane %v1428_v51, 1  ;;  %v1448_v59 = vsel %vm525_vm1, %v1445_v32, %v1447_v54 }
 0x2cb   : > { %v1431_v62 = vsel %vm486_vm0, %v1426_v6, %v1430_v58  ;;  %v1434_v9 = vor.u32 %v1432_v8, %v1430_v58 }
 0x2d0   : > { %1848 = vmatmul.bf16.gmra.mxu1 %v1396_v52 }
 0x2d3   : > { %1901 = vmatmul.bf16.gmra.mxu3 %v1448_v59 }
 0x2d5   : > { %1872 = vmatmul.bf16.gmra.mxu2 %v1431_v62 }
 0x2d7   : > { %1930 = vmatmul.bf16.gmra.mxu0 %v1480_v31 }
 0x2e0   : > { %1949 = vmatmul.bf16.vlgmr.msra.gmra.mxu1 %v1490_v7 }
 0x2e3   : > { %1906 = vmatmul.bf16.gmra.mxu3 %v1447_v54 }
 0x2e5   : > { %1877 = vmatmul.bf16.gmra.mxu2 %v1434_v9 }
 0x2e7   : > { %1935 = vmatmul.bf16.gmra.mxu0 %v1479_v60 }
 0x2f0   : > { %1954 = vmatmul.bf16.gmra.mxu1 %v1492_v12  ;;  %v1834_v34 = vpop.f32.mrf.mxu1 }
 0x2f1   : > { %v1835_v28 = vadd.f32 %v4815_v26, %v1834_v34 }
 0x2f8   : > { %v1836_v25 = vpop.f32.mrf.mxu1 }
 0x2f9   : > { %v1837_v36 = vadd.f32 %v4815_v26, %v1836_v25 }
 0x300   : > { %1959 = vmatmul.bf16.gmra.mxu1 %v1494_v18 }
 0x310   : > { %1964 = vmatmul.bf16.gmra.mxu1 %v1493_v17 }
 0x32d   : > { %v1839_v53 = vpop.f32.mrf.mxu1 }
 0x32e   : > { %v1840_v44 = vadd.f32 %v4815_v26, %v1839_v53 }
 0x334   : > { %v1921_v24 = vpop.f32.mrf.mxu0 }
 0x335   : > { %v1841_v0 = vpop.f32.mrf.mxu1 }
 0x336   : > { %v1892_v22 = vpop.f32.mrf.mxu3  ;;  %v1842_v55 = vadd.f32 %v4815_v26, %v1841_v0 }
 0x338   : > { %v1863_v19 = vpop.f32.mrf.mxu2 }
 0x339   : > { %v1864_v32 = vadd.f32 %v1863_v19, %v1835_v28 }
 0x33b   : > { %v1893_v27 = vadd.f32 %v1892_v22, %v1864_v32 }
 0x33c   : > { %v1923_v15 = vpop.f32.mrf.mxu0 }
 0x33d   : > { %v1844_v45 = vpop.f32.mrf.mxu1  ;;  %v1922_v56 = vadd.f32 %v1921_v24, %v1893_v27 }
 0x33e   : > { %v1894_v10 = vpop.f32.mrf.mxu3  ;;  %v1845_v63 = vadd.f32 %v4815_v26, %v1844_v45 }
 0x340   : > { %v1865_v23 = vpop.f32.mrf.mxu2 }
 0x341   : > { %v1866_v37 = vadd.f32 %v1865_v23, %v1837_v36 }
 0x343   : > { %v1895_v29 = vadd.f32 %v1894_v10, %v1866_v37 }
 0x344   : > { %v1926_v41 = vpop.f32.mrf.mxu0 }
 0x345   : > { %v1846_v20 = vpop.f32.mrf.mxu1  ;;  %v1924_v47 = vadd.f32 %v1923_v15, %v1895_v29 }
 0x346   : > { %v1897_v38 = vpop.f32.mrf.mxu3  ;;  %v1847_v12 = vadd.f32 %v4815_v26, %v1846_v20 }
 0x348   : > { %v1868_v35 = vpop.f32.mrf.mxu2 }
 0x349   : > { %v1869_v46 = vadd.f32 %v1868_v35, %v1840_v44 }
 0x34b   : > { %v1898_v54 = vadd.f32 %v1897_v38, %v1869_v46 }
 0x34c   : > { %v1928_v57 = vpop.f32.mrf.mxu0 }
 0x34d   : > { %v1849_v14 = vpop.f32.mrf.mxu1  ;;  %v1927_v6 = vadd.f32 %v1926_v41, %v1898_v54 }
 0x34e   : > { %v1899_v52 = vpop.f32.mrf.mxu3  ;;  %v1850_v45 = vadd.f32 %v4815_v26, %v1849_v14 }
 0x350   : > { %v1870_v42 = vpop.f32.mrf.mxu2 }
 0x351   : > { %v1871_v59 = vadd.f32 %v1870_v42, %v1842_v55 }
 0x353   : > { %v1900_v62 = vadd.f32 %v1899_v52, %v1871_v59 }
 0x354   : > { %v1931_v4 = vpop.f32.mrf.mxu0 }
 0x355   : > { %v1851_v30 = vpop.f32.mrf.mxu1  ;;  %v1929_v5 = vadd.f32 %v1928_v57, %v1900_v62 }
 0x356   : > { %v1902_v31 = vpop.f32.mrf.mxu3  ;;  %v1852_v27 = vadd.f32 %v4815_v26, %v1851_v30  ;;  %v4839_v26 = vld [vmem:[%s5294_s6] ss:$0 sm:$0xff] }
 0x358   : > { %v1873_v58 = vpop.f32.mrf.mxu2 }
 0x359   : > { %v1874_v3 = vadd.f32 %v1873_v58, %v1845_v63 }
 0x35b   : > { %v1903_v13 = vadd.f32 %v1902_v31, %v1874_v3 }
 0x35c   : > { %v1933_v0 = vpop.f32.mrf.mxu0 }
 0x35d   : > { %v1950_v40 = vpop.f32.mrf.mxu1  ;;  %v1932_v34 = vadd.f32 %v1931_v4, %v1903_v13 }
 0x35e   : > { %v4819_v39 = vadd.f32 %v1950_v40, %v1922_v56  ;;  %v1904_v17 = vpop.f32.mrf.mxu3 }
 0x360   : > { %1970 = vadd.xlane.f32.xlu1 %v4819_v39  ;;  %v1875_v7 = vpop.f32.mrf.mxu2 }
 0x361   : > { %v1876_v18 = vadd.f32 %v1875_v7, %v1847_v12  ;;  %v4055_v12 = vld [vmem:[%s5290_s2 + $0x2b8] sm:$0xff] }
 0x362   : > { %2696 = vmatpush.bf16.msra.mxu2 %v4055_v12  ;;  %v4048_v12 = vld [vmem:[%s5290_s2 + $0x280] sm:$0xff] }
 0x363   : > { %v1905_v22 = vadd.f32 %v1904_v17, %v1876_v18 }
 0x364   : > { %v1936_v35 = vpop.f32.mrf.mxu0 }
 0x365   : > { %v1952_v49 = vpop.f32.mrf.mxu1  ;;  %v1934_v23 = vadd.f32 %v1933_v0, %v1905_v22 }
 0x366   : > { %v4823_v51 = vadd.f32 %v1952_v49, %v1924_v47  ;;  %v1907_v28 = vpop.f32.mrf.mxu3 }
 0x368   : > { %1972 = vadd.xlane.f32.xlu0 %v4823_v51  ;;  %v1878_v19 = vpop.f32.mrf.mxu2 }
 0x369   : > { %v1879_v24 = vadd.f32 %v1878_v19, %v1850_v45 }
 0x36b   : > { %v1908_v15 = vadd.f32 %v1907_v28, %v1879_v24 }
 0x36c   : > { %v1938_v41 = vpop.f32.mrf.mxu0 }
 0x36d   : > { %v1955_v60 = vpop.f32.mrf.mxu1  ;;  %v1937_v37 = vadd.f32 %v1936_v35, %v1908_v15 }
 0x36e   : > { %v4827_v61 = vadd.f32 %v1955_v60, %v1927_v6  ;;  %v1909_v40 = vpop.f32.mrf.mxu3 }
 0x370   : > { %1974 = vadd.xlane.f32.xlu2 %v4827_v61  ;;  %v1880_v20 = vpop.f32.mrf.mxu2 }
 0x371   : > { %v1881_v36 = vadd.f32 %v1880_v20, %v1852_v27  ;;  %v4054_v27 = vld [vmem:[%s5290_s2 + $0x2b0] sm:$0xff] }
 0x372   : > { %2697 = vmatpush.bf16.msra.mxu2 %v4054_v27 }
 0x373   : > { %v1910_v29 = vadd.f32 %v1909_v40, %v1881_v36  ;;  %v4052_v40 = vld [vmem:[%s5290_s2 + $0x2a0] sm:$0xff] }
 0x375   : > { %v1957_v8 = vpop.f32.mrf.mxu1  ;;  %v1939_v14 = vadd.f32 %v1938_v41, %v1910_v29 }
 0x376   : > { %v1958_v9 = vadd.f32 %v1957_v8, %v1929_v5 }
 0x378   : > { %1976 = vadd.xlane.f32.xlu2 %v1958_v9 }
 0x37d   : > { %v1960_v25 = vpop.f32.mrf.mxu1 }
 0x37e   : > { %v1961_v53 = vadd.f32 %v1960_v25, %v1932_v34 }
 0x380   : > { %1978 = vadd.xlane.f32.xlu2 %v1961_v53 }
 0x385   : > { %v1962_v10 = vpop.f32.mrf.mxu1 }
 0x386   : > { %v1963_v32 = vadd.f32 %v1962_v10, %v1934_v23 }
 0x388   : > { %1980 = vadd.xlane.f32.xlu2 %v1963_v32 }
 0x38d   : > { %v1965_v56 = vpop.f32.mrf.mxu1 }
 0x38e   : > { %v1966_v38 = vadd.f32 %v1965_v56, %v1937_v37  ;;  %v4053_v56 = vld [vmem:[%s5290_s2 + $0x2a8] sm:$0xff] }
 0x38f   : > { %2698 = vmatpush.bf16.msra.mxu2 %v4053_v56 }
 0x390   : > { %1982 = vadd.xlane.f32.xlu1 %v1966_v38 }
 0x393   : > { %2699 = vmatpush.bf16.msra.mxu2 %v4052_v40 }
 0x395   : > { %v1967_v42 = vpop.f32.mrf.mxu1 }
 0x396   : > { %v1968_v44 = vadd.f32 %v1967_v42, %v1939_v14  ;;  %v4051_v14 = vld [vmem:[%s5290_s2 + $0x298] sm:$0xff] }
 0x397   : > { %2700 = vmatpush.bf16.msra.mxu2 %v4051_v14 }
 0x398   : > { %v1984_v46 = vsel %vm1068_vm4, %v1968_v44, 0.0 }
 0x399   : > { %1985 = vadd.xlane.f32.xlu0 %v1984_v46 }
 0x3d3   : > { %v1971_v47 = vpop.xlane.xlu1 %1970 }
 0x3d4   : > { %v1987_v49 = vmul.f32 0.010416667, %v1971_v47 }
 0x3d6   : > { %v1995_v52 = vsub.f32 %v4819_v39, %v1987_v49  ;;  %v4050_v49 = vld [vmem:[%s5290_s2 + $0x290] sm:$0xff] }
 0x3d7   : > { %2701 = vmatpush.bf16.msra.mxu2 %v4050_v49 }
 0x3d8   : > { %v4842_v30 = vmul.f32 %v4839_v26, %v1995_v52  ;;  %v4071_v52 = vld [vmem:[%s5290_s2 + $0x338] sm:$0xff] }
 0x3d9   : > { %2754 = vmatpush.bf16.msrb.mxu0 %v4071_v52 }
 0x3da   : > { %v2011_v54 = vmul.f32 %v4842_v30, %v4842_v30 }
 0x3db   : > { %v1973_v55 = vpop.xlane.xlu0 %1972 }
 0x3dc   : > { %v1988_v57 = vmul.f32 0.010416667, %v1973_v55  ;;  %2019 = vadd.xlane.f32.xlu2 %v2011_v54 }
 0x3de   : > { %v1996_v58 = vsub.f32 %v4823_v51, %v1988_v57  ;;  %v4063_v57 = vld [vmem:[%s5290_s2 + $0x2f8] sm:$0xff] }
 0x3df   : > { %2725 = vmatpush.bf16.msra.mxu3 %v4063_v57  ;;  %v4066_v57 = vld [vmem:[%s5290_s2 + $0x310] sm:$0xff] }
 0x3e0   : > { %v4848_v59 = vmul.f32 %v4839_v26, %v1996_v58 }
 0x3e2   : > { %v2012_v39 = vmul.f32 %v4848_v59, %v4848_v59 }
 0x3e3   : > { %v1975_v6 = vpop.xlane.xlu2 %1974 }
 0x3e4   : > { %v1989_v60 = vmul.f32 0.010416667, %v1975_v6  ;;  %2021 = vadd.xlane.f32.xlu1 %v2012_v39  ;;  %v4049_v6 = vld [vmem:[%s5290_s2 + $0x288] sm:$0xff] }
 0x3e5   : > { %2702 = vmatpush.bf16.msra.mxu2 %v4049_v6 }
 0x3e6   : > { %v1997_v62 = vsub.f32 %v4827_v61, %v1989_v60  ;;  %v4070_v60 = vld [vmem:[%s5290_s2 + $0x330] sm:$0xff] }
 0x3e7   : > { %2755 = vmatpush.bf16.msrb.mxu0 %v4070_v60 }
 0x3e8   : > { %v4854_v31 = vmul.f32 %v4839_v26, %v1997_v62  ;;  %v4079_v62 = vld [vmem:[%s5290_s2 + $0x378] sm:$0xff] }
 0x3e9   : > { %2783 = vmatpush.bf16.msrb.mxu1 %v4079_v62  ;;  %2703 = vmatpush.bf16.msra.mxu2 %v4048_v12 }
 0x3ea   : > { %v2013_v63 = vmul.f32 %v4854_v31, %v4854_v31 }
 0x3eb   : > { %v1977_v4 = vpop.xlane.xlu2 %1976 }
 0x3ec   : > { %v1990_v3 = vmul.f32 0.010416667, %v1977_v4  ;;  %2023 = vadd.xlane.f32.xlu0 %v2013_v63 }
 0x3ee   : > { %v1998_v51 = vsub.f32 %v1958_v9, %v1990_v3 }
 0x3f0   : > { %v4859_v5 = vmul.f32 %v4839_v26, %v1998_v51 }
 0x3f2   : > { %v2014_v7 = vmul.f32 %v4859_v5, %v4859_v5 }
 0x3f3   : > { %v1979_v8 = vpop.xlane.xlu2 %1978 }
 0x3f4   : > { %v1991_v13 = vmul.f32 0.010416667, %v1979_v8  ;;  %2025 = vadd.xlane.f32.xlu2 %v2014_v7  ;;  %v4062_v7 = vld [vmem:[%s5290_s2 + $0x2f0] sm:$0xff]  ;;  %v4925_v8 = vld [vmem:[%s5292_s4 + $0x1] ss:$0 sm:$0xff] }
 0x3f5   : > { %2726 = vmatpush.bf16.msra.mxu3 %v4062_v7 }
 0x3f6   : > { %v1999_v61 = vsub.f32 %v1961_v53, %v1991_v13 }
 0x3f8   : > { %v4867_v17 = vmul.f32 %v4839_v26, %v1999_v61 }
 0x3fa   : > { %v2015_v9 = vmul.f32 %v4867_v17, %v4867_v17 }
 0x3fb   : > { %v1981_v18 = vpop.xlane.xlu2 %1980 }
 0x3fc   : > { %v1992_v34 = vmul.f32 0.010416667, %v1981_v18  ;;  %2027 = vadd.xlane.f32.xlu1 %v2015_v9  ;;  %v4069_v9 = vld [vmem:[%s5290_s2 + $0x328] sm:$0xff]  ;;  %v4078_v18 = vld [vmem:[%s5290_s2 + $0x370] sm:$0xff] }
 0x3fd   : > { %2756 = vmatpush.bf16.msrb.mxu0 %v4069_v9  ;;  %2784 = vmatpush.bf16.msrb.mxu1 %v4078_v18 }
 0x3fe   : > { %v2000_v25 = vsub.f32 %v1963_v32, %v1992_v34  ;;  %v4940_v34 = vld [vmem:[%s5293_s5 + $0x1] ss:$0 sm:$0xff] }
 0x400   : > { %v4872_v0 = vmul.f32 %v4839_v26, %v2000_v25 }
 0x402   : > { %v2016_v53 = vmul.f32 %v4872_v0, %v4872_v0 }
 0x403   : > { %v1983_v19 = vpop.xlane.xlu1 %1982 }
 0x404   : > { %v1993_v22 = vmul.f32 0.010416667, %v1983_v19  ;;  %2029 = vadd.xlane.f32.xlu0 %v2016_v53 }
 0x406   : > { %v2001_v45 = vsub.f32 %v1966_v38, %v1993_v22  ;;  %v4061_v22 = vld [vmem:[%s5290_s2 + $0x2e8] sm:$0xff] }
 0x407   : > { %2727 = vmatpush.bf16.msra.mxu3 %v4061_v22 }
 0x408   : > { %v4877_v24 = vmul.f32 %v4839_v26, %v2001_v45 }
 0x40a   : > { %v2017_v23 = vmul.f32 %v4877_v24, %v4877_v24 }
 0x40c   : > { %v1986_v28 = vpop.xlane.xlu0 %1985  ;;  %2031 = vadd.xlane.f32.xlu2 %v2017_v23 }
 0x40d   : > { %v1994_v10 = vmul.f32 0.010416667, %v1986_v28 }
 0x40f   : > { %v2002_v32 = vsub.f32 %v1968_v44, %v1994_v10  ;;  %v4068_v10 = vld [vmem:[%s5290_s2 + $0x320] sm:$0xff] }
 0x410   : > { %2757 = vmatpush.bf16.msrb.mxu0 %v4068_v10 }
 0x411   : > { %v4882_v15 = vmul.f32 %v4839_v26, %v2002_v32 }
 0x413   : > { %v2018_v35 = vmul.f32 %v4882_v15, %v4882_v15 }
 0x415   : > { %v2033_v20 = vsel %vm1068_vm4, %v2018_v35, 0.0 }
 0x416   : > { %2034 = vadd.xlane.f32.xlu1 %v2033_v20 }
 0x44f   : > { %v2020_v36 = vpop.xlane.xlu2 %2019 }
 0x450   : > { %v2036_v37 = vmul.f32 0.010416667, %v2020_v36 }
 0x452   : > { %v2044_v38 = vadd.f32 0.0001, %v2036_v37  ;;  %v4060_v37 = vld [vmem:[%s5290_s2 + $0x2e0] sm:$0xff] }
 0x453   : > { %2728 = vmatpush.bf16.msra.mxu3 %v4060_v37 }
 0x454   : > { %4186 = vrsqrt.f32 %v2044_v38  ;;  %vm2058_vm12 = vweird.f32 %v2044_v38 }
 0x457   : > { %v2022_v29 = vpop.xlane.xlu1 %2021 }
 0x458   : > { %v2037_v41 = vmul.f32 0.010416667, %v2022_v29  ;;  %v4067_v29 = vld [vmem:[%s5290_s2 + $0x318] sm:$0xff] }
 0x459   : > { %2758 = vmatpush.bf16.msrb.mxu0 %v4067_v29 }
 0x45a   : > { %v4187_v42 = vpop.eup %4186  ;;  %v2045_v44 = vadd.f32 0.0001, %v2037_v41  ;;  %v4076_v41 = vld [vmem:[%s5290_s2 + $0x360] sm:$0xff] }
 0x45b   : > { %v2053_v46 = vmul.f32 %v4187_v42, %v2044_v38  ;;  %vm2059_vm11 = vweird.f32 %v4187_v42 }
 0x45c   : > { %4188 = vrsqrt.f32 %v2045_v44  ;;  %vm2060_vm13 = vmor %vm2058_vm12, %vm2059_vm11  ;;  %vm2068_vm15 = vweird.f32 %v2045_v44 }
 0x45d   : > { %v2054_v47 = vmul.f32 %v4187_v42, %v2053_v46  ;;  %2759 = vmatpush.bf16.msrb.mxu0 %v4066_v57 }
 0x45f   : > { %v2055_v54 = vmul.f32 0.5, %v2054_v47  ;;  %v2024_v55 = vpop.xlane.xlu0 %2023  ;;  %v4059_v47 = vld [vmem:[%s5290_s2 + $0x2d8] sm:$0xff] }
 0x460   : > { %v2038_v58 = vmul.f32 0.010416667, %v2024_v55  ;;  %2729 = vmatpush.bf16.msra.mxu3 %v4059_v47 }
 0x461   : > { %v2056_v39 = vsub.f32 1.5, %v2055_v54 }
 0x462   : > { %v4189_v63 = vpop.eup %4188  ;;  %v4917_v4 = vadd.f32 0.0001, %v2038_v58 }
 0x463   : > { %v2057_v3 = vmul.f32 %v4187_v42, %v2056_v39  ;;  %v2063_v51 = vmul.f32 %v4189_v63, %v2045_v44  ;;  %vm2069_vm14 = vweird.f32 %v4189_v63 }
 0x464   : > { %4190 = vrsqrt.f32 %v4917_v4  ;;  %vm2070_vm6 = vmor %vm2068_vm15, %vm2069_vm14  ;;  %vm2078_vm8 = vweird.f32 %v4917_v4 }
 0x465   : > { %v2061_v13 = vsel %vm2060_vm13, %v4187_v42, %v2057_v3  ;;  %v2064_v61 = vmul.f32 %v4189_v63, %v2063_v51  ;;  %v4058_v3 = vld [vmem:[%s5290_s2 + $0x2d0] sm:$0xff] }
 0x466   : > { %v2132_v25 = vmul.f32 %v2061_v13, %v4842_v30  ;;  %v4077_v30 = vld [vmem:[%s5290_s2 + $0x368] sm:$0xff]  ;;  %2730 = vmatpush.bf16.msra.mxu3 %v4058_v3 }
 0x467   : > { %v2065_v53 = vmul.f32 0.5, %v2064_v61  ;;  %v2026_v19 = vpop.xlane.xlu2 %2025  ;;  %2785 = vmatpush.bf16.msrb.mxu1 %v4077_v30  ;;  %v4074_v61 = vld [vmem:[%s5290_s2 + $0x350] sm:$0xff] }
 0x468   : > { %v2145_v45 = vmul.f32 %v4925_v8, %v2132_v25  ;;  %v2039_v23 = vmul.f32 0.010416667, %v2026_v19 }
 0x469   : > { %v2066_v28 = vsub.f32 1.5, %v2065_v53  ;;  %v4057_v53 = vld [vmem:[%s5290_s2 + $0x2c8] sm:$0xff] }
 0x46a   : > { %v4191_v32 = vpop.eup %4190  ;;  %v2158_v35 = vadd.f32 %v4940_v34, %v2145_v45  ;;  %v4954_v20 = vadd.f32 0.0001, %v2039_v23  ;;  %2731 = vmatpush.bf16.msra.mxu3 %v4057_v53 }
 0x46b   : > { %v2067_v27 = vmul.f32 %v4189_v63, %v2066_v28  ;;  %v2073_v36 = vmul.f32 %v4191_v32, %v4917_v4  ;;  %2786 = vmatpush.bf16.msrb.mxu1 %v4076_v41  ;;  %vm2079_vm7 = vweird.f32 %v4191_v32  ;;  %v4065_v4 = vld [vmem:[%s5290_s2 + $0x308] sm:$0xff]  ;;  %v4064_v28 = vld [vmem:[%s5290_s2 + $0x300] sm:$0xff] }
 0x46c   : > { %v2166_v56 = vmax.f32 %v2158_v35, 0.0  ;;  %4192 = vrsqrt.f32 %v4954_v20  ;;  %vm2080_vm9 = vmor %vm2078_vm8, %vm2079_vm7  ;;  %2760 = vmatpush.bf16.msrb.mxu0 %v4065_v4  ;;  %vm2088_vm11 = vweird.f32 %v4954_v20 }
 0x46d   : > { %v2071_v38 = vsel %vm2070_vm6, %v4189_v63, %v2067_v27  ;;  %v2074_v40 = vmul.f32 %v4191_v32, %v2073_v36 }
 0x46e   : > { %v2174_v14 = vmul.f32 %v2166_v56, %v4600_v1  ;;  %v2133_v42 = vmul.f32 %v2071_v38, %v4848_v59  ;;  %v4075_v59 = vld [vmem:[%s5290_s2 + $0x358] sm:$0xff]  ;;  %v4056_v56 = vld [vmem:[%s5290_s2 + $0x2c0] sm:$0xff] }
 0x46f   : > { %v2075_v44 = vmul.f32 0.5, %v2074_v40  ;;  %v2028_v46 = vpop.xlane.xlu1 %2027  ;;  %2787 = vmatpush.bf16.msrb.mxu1 %v4075_v59  ;;  %2732 = vmatpush.bf16.msra.mxu3 %v4056_v56 }
 0x470   : > { %v2182_v49 = vpack.c.bf16 %v2174_v14, %v2174_v14  ;;  %v2146_v52 = vmul.f32 %v4925_v8, %v2133_v42  ;;  %v2040_v54 = vmul.f32 0.010416667, %v2028_v46  ;;  %2761 = vmatpush.bf16.msrb.mxu0 %v4064_v28 }
 0x471   : > { %v2076_v55 = vsub.f32 1.5, %v2075_v44 }
 0x472   : > { %v4193_v58 = vpop.eup %4192  ;;  %v2198_v39 = vrot.slane %v2182_v49, 7  ;;  %v2159_v6 = vadd.f32 %v4940_v34, %v2146_v52  ;;  %v4980_v60 = vadd.f32 0.0001, %v2040_v54 }
 0x473   : > { %v2077_v62 = vmul.f32 %v4191_v32, %v2076_v55  ;;  %v2083_v63 = vmul.f32 %v4193_v58, %v4954_v20  ;;  %2788 = vmatpush.bf16.msrb.mxu1 %v4074_v61  ;;  %vm2089_vm10 = vweird.f32 %v4193_v58  ;;  %v4072_v20 = vld [vmem:[%s5290_s2 + $0x340] sm:$0xff] }
 0x474   : > { %2228 = vst [vmem:[#allocation2] sm:$0xe] %v2198_v39  ;;  %v2167_v51 = vmax.f32 %v2159_v6, 0.0  ;;  %4194 = vrsqrt.f32 %v4980_v60  ;;  %v2199_v30 = vrot.slane %v2198_v39, 4  ;;  %vm2090_vm12 = vmor %vm2088_vm11, %vm2089_vm10  ;;  %vm2098_vm14 = vweird.f32 %v4980_v60 }
 0x475   : > { %v2081_v7 = vsel %vm2080_vm9, %v4191_v32, %v2077_v62  ;;  %v2084_v13 = vmul.f32 %v4193_v58, %v2083_v63 }
 0x476   : > { %v2175_v12 = vmul.f32 %v2167_v51, %v4606_v16  ;;  %v2134_v9 = vmul.f32 %v2081_v7, %v4854_v31  ;;  %v4073_v31 = vld [vmem:[%s5290_s2 + $0x348] sm:$0xff] }
 0x477   : > { %v2085_v18 = vmul.f32 0.5, %v2084_v13  ;;  %v2030_v25 = vpop.xlane.xlu0 %2029  ;;  %2789 = vmatpush.bf16.msrb.mxu1 %v4073_v31 }
 0x478   : > { %v2183_v19 = vpack.c.bf16 %v2175_v12, %v2175_v12  ;;  %v2147_v22 = vmul.f32 %v4925_v8, %v2134_v9  ;;  %v2041_v45 = vmul.f32 0.010416667, %v2030_v25 }
 0x479   : > { %v2086_v23 = vsub.f32 1.5, %v2085_v18 }
 0x47a   : > { %v4195_v10 = vpop.eup %4194  ;;  %v2200_v32 = vrot.slane %v2183_v19, 7  ;;  %v2160_v35 = vadd.f32 %v4940_v34, %v2147_v22  ;;  %v5008_v27 = vadd.f32 0.0001, %v2041_v45 }
 0x47b   : > { %v2087_v36 = vmul.f32 %v4193_v58, %v2086_v23  ;;  %v2093_v37 = vmul.f32 %v4195_v10, %v4980_v60  ;;  %2790 = vmatpush.bf16.msrb.mxu1 %v4072_v20  ;;  %vm2099_vm13 = vweird.f32 %v4195_v10  ;;  %v2245_v45 = vld [vmem:[#allocation2] sm:$0xe] }
 0x47c   : > { %v2201_v38 = vsel %vm4611_vm5, %v2199_v30, %v2200_v32  ;;  %v2168_v40 = vmax.f32 %v2160_v35, 0.0  ;;  %4196 = vrsqrt.f32 %v5008_v27  ;;  %v2202_v57 = vrot.slane %v2200_v32, 4  ;;  %vm2100_vm15 = vmor %vm2098_vm14, %vm2099_vm13 }
 0x47d   : > { %2229 = vst [vmem:[#allocation2 + $0x4] sm:$0xf] %v2201_v38  ;;  %v2091_v29 = vsel %vm2090_vm12, %v4193_v58, %v2087_v36  ;;  %v2094_v41 = vmul.f32 %v4195_v10, %v2093_v37  ;;  %vm2108_vm7 = vweird.f32 %v5008_v27  ;;  %v2311_v56 = vunpack.c.l.b16 %v2245_v45 }
 0x47e   : > { %v2176_v14 = vmul.f32 %v2168_v40, %v4618_v50  ;;  %v2135_v42 = vmul.f32 %v2091_v29, %v4859_v5 }
 0x47f   : > { %v2095_v44 = vmul.f32 0.5, %v2094_v41  ;;  %v2032_v46 = vpop.xlane.xlu2 %2031  ;;  %v4087_v41 = vld [vmem:[%s5290_s2 + $0x3b8] sm:$0xff] }
 0x480   : > { %v2184_v47 = vpack.c.bf16 %v2176_v14, %v2176_v14  ;;  %v2148_v49 = vmul.f32 %v4925_v8, %v2135_v42  ;;  %v2042_v52 = vmul.f32 0.010416667, %v2032_v46  ;;  %2812 = vmatpush.bf16.msrb.mxu2 %v4087_v41 }
 0x481   : > { %v2096_v54 = vsub.f32 1.5, %v2095_v44 }
 0x482   : > { %v4197_v55 = vpop.eup %4196  ;;  %v2203_v59 = vrot.slane %v2184_v47, 7  ;;  %v2161_v58 = vadd.f32 %v4940_v34, %v2148_v49  ;;  %v5026_v39 = vadd.f32 0.0001, %v2042_v52 }
 0x483   : > { %v2097_v6 = vmul.f32 %v4195_v10, %v2096_v54  ;;  %v2103_v5 = vmul.f32 %v4197_v55, %v5008_v27  ;;  %vm2109_vm6 = vweird.f32 %v4197_v55 }
 0x484   : > { %v2204_v62 = vsel %vm4611_vm5, %v2202_v57, %v2203_v59  ;;  %v2169_v63 = vmax.f32 %v2161_v58, 0.0  ;;  %4198 = vrsqrt.f32 %v5026_v39  ;;  %v5033_v3 = vld [vmem:[#allocation2] sm:$0xff]   ;;  %v2205_v53 = vrot.slane %v2203_v59, 4  ;;  %vm2110_vm8 = vmor %vm2108_vm7, %vm2109_vm6 }
 0x485   : > { %2230 = vst [vmem:[#allocation2 + $0x8] sm:$0xf] %v2204_v62  ;;  %v2101_v51 = vsel %vm2100_vm15, %v4195_v10, %v2097_v6  ;;  %v2104_v7 = vmul.f32 %v4197_v55, %v2103_v5  ;;  %2704 = vmatmul.bf16.vlgmr.msra.gmra.mxu2 %v5033_v3  ;;  %v2278_v37 = vshll.u32 %v5033_v3, 16  ;;  %vm2118_vm10 = vweird.f32 %v5026_v39 }
 0x486   : > { %v2177_v13 = vmul.f32 %v2169_v63, %v4739_v2  ;;  %v2136_v60 = vmul.f32 %v2101_v51, %v4867_v17  ;;  %v4135_v17 = vunpack.c.h.b16 %v5033_v3  ;;  %v2276_v54 = vshrl.u32 %v5033_v3, 16  ;;  %v4085_v51 = vld [vmem:[%s5290_s2 + $0x3a8] sm:$0xff] }
 0x487   : > { %v2105_v4 = vmul.f32 0.5, %v2104_v7  ;;  %v2280_v44 = vrot.slane %v2278_v37, 1 }
 0x488   : > { %v2185_v61 = vpack.c.bf16 %v2177_v13, %v2177_v13  ;;  %v2149_v12 = vmul.f32 %v4925_v8, %v2136_v60  ;;  %v2312_v29 = vpack.c.b16 %v4135_v17, %v2311_v56 }
 0x489   : > { %v2106_v9 = vsub.f32 1.5, %v2105_v4  ;;  %v2035_v18 = vpop.xlane.xlu1 %2034  ;;  %v2281_v7 = vor.u32 %v2280_v44, %v2276_v54 }
 0x48a   : > { %v4199_v25 = vpop.eup %4198  ;;  %v2206_v19 = vrot.slane %v2185_v61, 7  ;;  %v2162_v22 = vadd.f32 %v4940_v34, %v2149_v12  ;;  %v2043_v23 = vmul.f32 0.010416667, %v2035_v18  ;;  %v2331_v57 = vshll.u32 %v2312_v29, 16 }
 0x48b   : > { %v2107_v28 = vmul.f32 %v4197_v55, %v2106_v9  ;;  %v2113_v31 = vmul.f32 %v4199_v25, %v5026_v39  ;;  %vm2119_vm9 = vweird.f32 %v4199_v25  ;;  %v2313_v39 = vrot.slane %v2312_v29, 1 }
 0x48c   : > { %v2207_v10 = vsel %vm4611_vm5, %v2205_v53, %v2206_v19  ;;  %v2170_v30 = vmax.f32 %v2162_v22, 0.0  ;;  %v5045_v32 = vadd.f32 0.0001, %v2043_v23  ;;  %v2208_v46 = vrot.slane %v2206_v19, 4  ;;  %vm2120_vm11 = vmor %vm2118_vm10, %vm2119_vm9 }
 0x48d   : > { %2231 = vst [vmem:[#allocation2 + $0xc] sm:$0xf] %v2207_v10  ;;  %v2111_v35 = vsel %vm2110_vm8, %v4197_v55, %v2107_v28  ;;  %v2114_v36 = vmul.f32 %v4199_v25, %v2113_v31  ;;  %v2328_v55 = vshrl.u32 %v2312_v29, 16  ;;  %v4084_v31 = vld [vmem:[%s5290_s2 + $0x3a0] sm:$0xff] }
 0x48e   : > { %v2178_v38 = vmul.f32 %v2170_v30, %v4759_v33  ;;  %v2137_v27 = vmul.f32 %v2111_v35, %v4872_v0  ;;  %4200 = vrsqrt.f32 %v5045_v32  ;;  %v4086_v0 = vld [vmem:[%s5290_s2 + $0x3b0] sm:$0xff]  ;;  %vm2128_vm13 = vweird.f32 %v5045_v32 }
 0x48f   : > { %v2115_v40 = vmul.f32 0.5, %v2114_v36  ;;  %2813 = vmatpush.bf16.msrb.mxu2 %v4086_v0  ;;  %v2330_v18 = vrot.slane %v2328_v55, 1 }
 0x490   : > { %v2186_v20 = vpack.c.bf16 %v2178_v38, %v2178_v38  ;;  %v2150_v14 = vmul.f32 %v4925_v8, %v2137_v27 }
 0x491   : > { %v2116_v42 = vsub.f32 1.5, %v2115_v40 }
 0x492   : > { %v2209_v47 = vrot.slane %v2186_v20, 7  ;;  %v2163_v49 = vadd.f32 %v4940_v34, %v2150_v14  ;;  %v4083_v20 = vld [vmem:[%s5290_s2 + $0x398] sm:$0xff] }
 0x493   : > { %v2117_v52 = vmul.f32 %v4199_v25, %v2116_v42  ;;  %2814 = vmatpush.bf16.msrb.mxu2 %v4085_v51 }
 0x494   : > { %v4201_v59 = vpop.eup %4200  ;;  %v2210_v58 = vsel %vm4611_vm5, %v2208_v46, %v2209_v47  ;;  %v2171_v6 = vmax.f32 %v2163_v49, 0.0  ;;  %v5066_v5 = vld [vmem:[#allocation2 + $0x8] sm:$0xff]  ;;  %v2211_v10 = vrot.slane %v2209_v47, 4 }
 0x495   : > { %2232 = vst [vmem:[#allocation2 + $0x10] sm:$0xf] %v2210_v58  ;;  %v2121_v62 = vsel %vm2120_vm11, %v4199_v25, %v2117_v52  ;;  %v2123_v63 = vmul.f32 %v4201_v59, %v5045_v32  ;;  %2709 = vmatmul.bf16.gmra.mxu2 %v5066_v5  ;;  %v2314_v4 = vrot.slane %v5066_v5, 1  ;;  %v2283_v61 = vshll.u32 %v5066_v5, 16  ;;  %v4082_v32 = vld [vmem:[%s5290_s2 + $0x390] sm:$0xff] }
 0x496   : > { %v2179_v13 = vmul.f32 %v2171_v6, %v4749_v11  ;;  %v2138_v60 = vmul.f32 %v2121_v62, %v4877_v24  ;;  %v2287_v9 = vshrl.u32 %v5066_v5, 16  ;;  %v2333_v25 = vrot.slane %v2331_v57, 2 }
 0x497   : > { %v2124_v12 = vmul.f32 %v4201_v59, %v2123_v63  ;;  %v2315_v22 = vsel %vm525_vm1, %v2313_v39, %v2314_v4  ;;  %v2285_v45 = vrot.slane %v2283_v61, 1  ;;  %v2336_v24 = vrot.slane %v2283_v61, 2  ;;  %2815 = vmatpush.bf16.msrb.mxu2 %v4084_v31 }
 0x498   : > { %v2187_v53 = vpack.c.bf16 %v2179_v13, %v2179_v13  ;;  %v2151_v19 = vmul.f32 %v4925_v8, %v2138_v60  ;;  %2762 = vmatmul.bf16.vlgmr.msrb.gmra.mxu0 %v2315_v22  ;;  %v2335_v28 = vrot.slane %v2287_v9, 1  ;;  %vm2129_vm12 = vweird.f32 %v4201_v59 }
 0x499   : > { %v2125_v23 = vmul.f32 0.5, %v2124_v12  ;;  %v2286_v36 = vsel %vm486_vm0, %v2281_v7, %v2285_v45  ;;  %v2334_v56 = vor.u32 %v2333_v25, %v2330_v18  ;;  %vm2130_vm14 = vmor %vm2128_vm13, %vm2129_vm12  ;;  %v2289_v6 = vor.u32 %v2287_v9, %v2285_v45  ;;  %v4080_v7 = vld [vmem:[%s5290_s2 + $0x380] sm:$0xff] }
 0x49a   : > { %v2212_v30 = vrot.slane %v2187_v53, 7  ;;  %v2164_v35 = vadd.f32 %v4940_v34, %v2151_v19  ;;  %2733 = vmatmul.bf16.vlgmr.msra.gmra.mxu3 %v2286_v36  ;;  %v2337_v38 = vor.u32 %v2336_v24, %v2335_v28 }
 0x49b   : > { %v2126_v37 = vsub.f32 1.5, %v2125_v23  ;;  %2816 = vmatpush.bf16.msrb.mxu2 %v4083_v20 }
 0x49c   : > { %v2213_v27 = vsel %vm4611_vm5, %v2211_v10, %v2212_v30  ;;  %v2172_v40 = vmax.f32 %v2164_v35, 0.0  ;;  %v2338_v41 = vsel %vm540_vm2, %v2334_v56, %v2337_v38  ;;  %v2214_v46 = vrot.slane %v2212_v30, 4 }
 0x49d   : > { %2233 = vst [vmem:[#allocation2 + $0x14] sm:$0xf] %v2213_v27  ;;  %v2127_v29 = vmul.f32 %v4201_v59, %v2126_v37  ;;  %2791 = vmatmul.bf16.vlgmr.msrb.gmra.mxu1 %v2338_v41 }
 0x49e   : > { %v2180_v14 = vmul.f32 %v2172_v40, %v4777_v48 }
 0x49f   : > { %v2131_v42 = vsel %vm2130_vm14, %v4201_v59, %v2127_v29  ;;  %2817 = vmatpush.bf16.msrb.mxu2 %v4082_v32  ;;  %v2247_v29 = vld [vmem:[#allocation2] sm:$0xc] }
 0x4a0   : > { %v2188_v44 = vpack.c.bf16 %v2180_v14, %v2180_v14  ;;  %v2139_v0 = vmul.f32 %v2131_v42, %v4882_v15  ;;  %v4081_v15 = vld [vmem:[%s5290_s2 + $0x388] sm:$0xff]  ;;  %v2357_v20 = vunpack.c.l.b16 %v2247_v29  ;;  %v2360_v42 = vrot.slane %v5066_v5, 2 }
 0x4a2   : > { %v2215_v47 = vrot.slane %v2188_v44, 7  ;;  %v2152_v49 = vmul.f32 %v4925_v8, %v2139_v0  ;;  %v2358_v14 = vpack.c.b16 %v4135_v17, %v2357_v20 }
 0x4a3   : > { %2818 = vmatpush.bf16.msrb.mxu2 %v4081_v15 }
 0x4a4   : > { %v2216_v52 = vsel %vm4611_vm5, %v2214_v46, %v2215_v47  ;;  %v2165_v54 = vadd.f32 %v4940_v34, %v2152_v49  ;;  %v5101_v55 = vld [vmem:[#allocation2 + $0x10] sm:$0xff]  ;;  %v2217_v12 = vrot.slane %v2215_v47, 4  ;;  %v2359_v44 = vrot.slane %v2358_v14, 2 }
 0x4a5   : > { %2234 = vst [vmem:[#allocation2 + $0x18] sm:$0xf] %v2216_v52  ;;  %2714 = vmatmul.bf16.gmra.mxu2 %v5101_v55  ;;  %v2316_v59 = vrot.slane %v5101_v55, 1  ;;  %v2291_v8 = vshll.u32 %v5101_v55, 16  ;;  %v2295_v58 = vshrl.u32 %v5101_v55, 16  ;;  %v2362_v47 = vrot.slane %v5101_v55, 2 }
 0x4a6   : > { %v2173_v57 = vmax.f32 %v2165_v54, 0.0  ;;  %v2361_v0 = vsel %vm573_vm3, %v2359_v44, %v2360_v42  ;;  %v5132_v55 = vld [vmem:[%s5291_s3 + $0x2] ss:$0 sm:$0xff] }
 0x4a7   : > { %v2317_v62 = vsel %vm525_vm1, %v2314_v4, %v2316_v59  ;;  %v2293_v63 = vrot.slane %v2291_v8, 1  ;;  %v2339_v39 = vrot.slane %v2295_v58, 1  ;;  %v2340_v51 = vrot.slane %v2291_v8, 2  ;;  %2819 = vmatpush.bf16.msrb.mxu2 %v4080_v7 }
 0x4a8   : > { %v2181_v34 = vmul.f32 %v2173_v57, %v4770_v43  ;;  %2767 = vmatmul.bf16.gmra.mxu0 %v2317_v62  ;;  %v2363_v49 = vsel %vm573_vm3, %v2360_v42, %v2362_v47 }
 0x4a9   : > { %v2294_v60 = vsel %vm486_vm0, %v2289_v6, %v2293_v63  ;;  %v2341_v61 = vor.u32 %v2340_v51, %v2339_v39 }
 0x4aa   : > { %v2189_v13 = vpack.c.bf16 %v2181_v34, %v2181_v34  ;;  %2738 = vmatmul.bf16.gmra.mxu3 %v2294_v60 }
 0x4ab   : > { %v2342_v18 = vsel %vm540_vm2, %v2337_v38, %v2341_v61  ;;  %v2297_v38 = vor.u32 %v2295_v58, %v2293_v63 }
 0x4ac   : > { %v2218_v9 = vrot.slane %v2189_v13, 7 }
 0x4ad   : > { %2796 = vmatmul.bf16.gmra.mxu1 %v2342_v18 }
 0x4ae   : > { %v2219_v4 = vsel %vm4611_vm5, %v2217_v12, %v2218_v9 }
 0x4af   : > { %2235 = vst [vmem:[#allocation2 + $0x1c] sm:$0x7] %v2219_v4 }
 0x4b6   : > { %v4145_v25 = vld [vmem:[#allocation2 + $0x18] sm:$0xff]  }
 0x4b7   : > { %v2243_v53 = vld [vmem:[#allocation2 + $0x1c] sm:$0x3]  ;;  %v4138_v22 = vunpack.c.l.b16 %v4145_v25  ;;  %v2344_v24 = vshrl.u32 %v4145_v25, 16  ;;  %v2347_v28 = vshll.u32 %v4145_v25, 16  ;;  %v2364_v52 = vrot.slane %v4145_v25, 2 }
 0x4b8   : > { %v2244_v19 = vld [vmem:[#allocation2 + $0x1c] sm:$0x7]  ;;  %v2263_v45 = vunpack.c.l.b16 %v2243_v53 }
 0x4b9   : > { %v2273_v23 = vunpack.c.l.b16 %v2244_v19  ;;  %v2346_v30 = vrot.slane %v2344_v24, 1  ;;  %v2349_v35 = vrot.slane %v2347_v28, 2  ;;  %v2365_v3 = vsel %vm573_vm3, %v2362_v47, %v2364_v52 }
 0x4ba   : > { %v2267_v31 = vpack.c.b16 %v2263_v45, %v4138_v22 }
 0x4bb   : > { %v2274_v10 = vpack.c.b16 %v2273_v23, %v4138_v22  ;;  %v2350_v56 = vor.u32 %v2349_v35, %v2346_v30 }
 0x4bc   : > { %2719 = vmatmul.bf16.gmra.mxu2 %v2267_v31 }
 0x4bd   : > { %v2318_v36 = vrot.slane %v2274_v10, 1  ;;  %v2299_v37 = vshll.u32 %v2274_v10, 16  ;;  %v2351_v40 = vsel %vm540_vm2, %v2341_v61, %v2350_v56  ;;  %v2303_v32 = vshrl.u32 %v2274_v10, 16 }
 0x4be   : > { %2801 = vmatmul.bf16.gmra.mxu1 %v2351_v40 }
 0x4bf   : > { %v2319_v21 = vsel %vm525_vm1, %v2316_v59, %v2318_v36  ;;  %v2301_v27 = vrot.slane %v2299_v37, 1 }
 0x4c0   : > { %2772 = vmatmul.bf16.gmra.mxu0 %v2319_v21 }
 0x4c1   : > { %v2302_v41 = vsel %vm486_vm0, %v2297_v38, %v2301_v27  ;;  %v2305_v46 = vor.u32 %v2303_v32, %v2301_v27 }
 0x4c2   : > { %2743 = vmatmul.bf16.gmra.mxu3 %v2302_v41 }
 0x4cc   : > { %2820 = vmatmul.bf16.vlgmr.msrb.gmra.mxu2 %v2361_v0 }
 0x4ce   : > { %2806 = vmatmul.bf16.gmra.mxu1 %v2350_v56 }
 0x4d0   : > { %2777 = vmatmul.bf16.gmra.mxu0 %v2318_v36 }
 0x4d2   : > { %2748 = vmatmul.bf16.gmra.mxu3 %v2305_v46 }
 0x4dc   : > { %2825 = vmatmul.bf16.gmra.mxu2 %v2363_v49 }
 0x4ec   : > { %2830 = vmatmul.bf16.gmra.mxu2 %v2365_v3 }
 0x4fc   : > { %2835 = vmatmul.bf16.gmra.mxu2 %v2364_v52 }
 0x508   : > { %v2705_v17 = vpop.f32.mrf.mxu2 }
 0x509   : > { %v2706_v63 = vadd.f32 %v5132_v55, %v2705_v17 }
 0x510   : > { %v2707_v5 = vpop.f32.mrf.mxu2 }
 0x511   : > { %v2708_v12 = vadd.f32 %v5132_v55, %v2707_v5 }
 0x515   : > { %v2763_v58 = vpop.f32.mrf.mxu0 }
 0x518   : > { %v2710_v54 = vpop.f32.mrf.mxu2 }
 0x519   : > { %v2711_v45 = vadd.f32 %v5132_v55, %v2710_v54 }
 0x51a   : > { %v2792_v6 = vpop.f32.mrf.mxu1 }
 0x51d   : > { %v2734_v59 = vpop.f32.mrf.mxu3  ;;  %v2765_v51 = vpop.f32.mrf.mxu0 }
 0x51e   : > { %v2735_v39 = vadd.f32 %v2734_v59, %v2706_v63 }
 0x520   : > { %v2712_v15 = vpop.f32.mrf.mxu2  ;;  %v2764_v60 = vadd.f32 %v2763_v58, %v2735_v39 }
 0x521   : > { %v2713_v36 = vadd.f32 %v5132_v55, %v2712_v15 }
 0x522   : > { %v2794_v13 = vpop.f32.mrf.mxu1  ;;  %v2793_v18 = vadd.f32 %v2792_v6, %v2764_v60 }
 0x525   : > { %v2736_v62 = vpop.f32.mrf.mxu3  ;;  %v2768_v53 = vpop.f32.mrf.mxu0 }
 0x526   : > { %v2737_v9 = vadd.f32 %v2736_v62, %v2708_v12 }
 0x528   : > { %v2715_v57 = vpop.f32.mrf.mxu2  ;;  %v2766_v19 = vadd.f32 %v2765_v51, %v2737_v9 }
 0x529   : > { %v2716_v20 = vadd.f32 %v5132_v55, %v2715_v57 }
 0x52a   : > { %v2797_v22 = vpop.f32.mrf.mxu1  ;;  %v2795_v28 = vadd.f32 %v2794_v13, %v2766_v19 }
 0x52d   : > { %v2739_v61 = vpop.f32.mrf.mxu3  ;;  %v2770_v35 = vpop.f32.mrf.mxu0 }
 0x52e   : > { %v2740_v24 = vadd.f32 %v2739_v61, %v2711_v45 }
 0x530   : > { %v2717_v8 = vpop.f32.mrf.mxu2  ;;  %v2769_v30 = vadd.f32 %v2768_v53, %v2740_v24 }
 0x531   : > { %v2718_v49 = vadd.f32 %v5132_v55, %v2717_v8 }
 0x532   : > { %v2799_v37 = vpop.f32.mrf.mxu1  ;;  %v2798_v38 = vadd.f32 %v2797_v22, %v2769_v30 }
 0x535   : > { %v2741_v23 = vpop.f32.mrf.mxu3 }
 0x536   : > { %v2742_v21 = vadd.f32 %v2741_v23, %v2713_v36 }
 0x538   : > { %v2771_v29 = vadd.f32 %v2770_v35, %v2742_v21 }
 0x53a   : > { %v2800_v44 = vadd.f32 %v2799_v37, %v2771_v29  ;;  %v4219_v29 = vld [vmem:[%s5294_s6] ss:$0 sm:$0xff] }
 0x53b   : > { %v2802_v14 = vpop.f32.mrf.mxu1 }
 0x53d   : > { %v2773_v41 = vpop.f32.mrf.mxu0 }
 0x53f   : > { %v2720_v34 = vpop.f32.mrf.mxu2 }
 0x540   : > { %v2721_v57 = vadd.f32 %v5132_v55, %v2720_v34 }
 0x543   : > { %v2804_v15 = vpop.f32.mrf.mxu1 }
 0x545   : > { %v2744_v56 = vpop.f32.mrf.mxu3  ;;  %v2775_v52 = vpop.f32.mrf.mxu0 }
 0x546   : > { %v2745_v42 = vadd.f32 %v2744_v56, %v2716_v20 }
 0x547   : > { %v2722_v7 = vpop.f32.mrf.mxu2 }
 0x548   : > { %v2774_v47 = vadd.f32 %v2773_v41, %v2745_v42  ;;  %v2723_v61 = vadd.f32 %v5132_v55, %v2722_v7 }
 0x54a   : > { %v2803_v17 = vadd.f32 %v2802_v14, %v2774_v47  ;;  %v4095_v47 = vld [vmem:[%s5295_s7 + $0x38] sm:$0xff] }
 0x54b   : > { %v2807_v60 = vpop.f32.mrf.mxu1  ;;  %3117 = vmatpush.bf16.msrb.mxu3 %v4095_v47 }
 0x54d   : > { %v2746_v0 = vpop.f32.mrf.mxu3  ;;  %v2778_v63 = vpop.f32.mrf.mxu0 }
 0x54e   : > { %v2747_v3 = vadd.f32 %v2746_v0, %v2718_v49 }
 0x54f   : > { %v2821_v4 = vpop.f32.mrf.mxu2 }
 0x550   : > { %v5136_v25 = vadd.f32 %v2821_v4, %v2793_v18  ;;  %v2776_v58 = vadd.f32 %v2775_v52, %v2747_v3 }
 0x552   : > { %2841 = vadd.xlane.f32.xlu0 %v5136_v25  ;;  %v2805_v62 = vadd.f32 %v2804_v15, %v2776_v58 }
 0x553   : > { %v2809_v22 = vpop.f32.mrf.mxu1 }
 0x555   : > { %v2749_v59 = vpop.f32.mrf.mxu3  ;;  %v2780_v53 = vpop.f32.mrf.mxu0 }
 0x556   : > { %v2750_v6 = vadd.f32 %v2749_v59, %v2721_v57 }
 0x557   : > { %v2823_v31 = vpop.f32.mrf.mxu2 }
 0x558   : > { %v5140_v10 = vadd.f32 %v2823_v31, %v2795_v28  ;;  %v2779_v13 = vadd.f32 %v2778_v63, %v2750_v6 }
 0x55a   : > { %2843 = vadd.xlane.f32.xlu2 %v5140_v10  ;;  %v2808_v9 = vadd.f32 %v2807_v60, %v2779_v13 }
 0x55d   : > { %v2751_v8 = vpop.f32.mrf.mxu3 }
 0x55e   : > { %v2752_v12 = vadd.f32 %v2751_v8, %v2723_v61 }
 0x55f   : > { %v2826_v27 = vpop.f32.mrf.mxu2 }
 0x560   : > { %v5144_v40 = vadd.f32 %v2826_v27, %v2798_v38  ;;  %v2781_v19 = vadd.f32 %v2780_v53, %v2752_v12  ;;  %v4092_v12 = vld [vmem:[%s5295_s7 + $0x20] sm:$0xff]  ;;  %v4090_v53 = vld [vmem:[%s5295_s7 + $0x10] sm:$0xff] }
 0x562   : > { %2845 = vadd.xlane.f32.xlu1 %v5144_v40  ;;  %v2810_v34 = vadd.f32 %v2809_v22, %v2781_v19  ;;  %v4089_v22 = vld [vmem:[%s5295_s7 + $0x8] sm:$0xff] }
 0x567   : > { %v2828_v32 = vpop.f32.mrf.mxu2 }
 0x568   : > { %v2829_v46 = vadd.f32 %v2828_v32, %v2800_v44 }
 0x56a   : > { %2847 = vadd.xlane.f32.xlu0 %v2829_v46 }
 0x56f   : > { %v2831_v5 = vpop.f32.mrf.mxu2 }
 0x570   : > { %v2832_v54 = vadd.f32 %v2831_v5, %v2803_v17  ;;  %v4093_v5 = vld [vmem:[%s5295_s7 + $0x28] sm:$0xff] }
 0x572   : > { %2849 = vadd.xlane.f32.xlu2 %v2832_v54 }
 0x577   : > { %v2833_v39 = vpop.f32.mrf.mxu2 }
 0x578   : > { %v2834_v51 = vadd.f32 %v2833_v39, %v2805_v62 }
 0x57a   : > { %2851 = vadd.xlane.f32.xlu1 %v2834_v51 }
 0x57f   : > { %v2836_v18 = vpop.f32.mrf.mxu2 }
 0x580   : > { %v2837_v4 = vadd.f32 %v2836_v18, %v2808_v9  ;;  %v4091_v9 = vld [vmem:[%s5295_s7 + $0x18] sm:$0xff] }
 0x582   : > { %2853 = vadd.xlane.f32.xlu2 %v2837_v4 }
 0x587   : > { %v2838_v45 = vpop.f32.mrf.mxu2 }
 0x588   : > { %v2839_v23 = vadd.f32 %v2838_v45, %v2810_v34 }
 0x58a   : > { %v2855_v24 = vsel %vm1068_vm4, %v2839_v23, 0.0 }
 0x58b   : > { %2856 = vadd.xlane.f32.xlu0 %v2855_v24 }
 0x5c5   : > { %v2842_v28 = vpop.xlane.xlu0 %2841 }
 0x5c6   : > { %v2858_v31 = vmul.f32 0.010416667, %v2842_v28 }
 0x5c8   : > { %v2866_v30 = vsub.f32 %v5136_v25, %v2858_v31 }
 0x5ca   : > { %v5154_v55 = vmul.f32 %v4839_v26, %v2866_v30 }
 0x5cc   : > { %v2882_v7 = vmul.f32 %v5154_v55, %v5154_v55 }
 0x5cd   : > { %v2844_v35 = vpop.xlane.xlu2 %2843 }
 0x5ce   : > { %v2859_v36 = vmul.f32 0.010416667, %v2844_v35  ;;  %2890 = vadd.xlane.f32.xlu1 %v2882_v7 }
 0x5d0   : > { %v2867_v37 = vsub.f32 %v5140_v10, %v2859_v36 }
 0x5d2   : > { %v5160_v56 = vmul.f32 %v4839_v26, %v2867_v37 }
 0x5d4   : > { %v2883_v21 = vmul.f32 %v5160_v56, %v5160_v56 }
 0x5d5   : > { %v2846_v38 = vpop.xlane.xlu1 %2845 }
 0x5d6   : > { %v2860_v27 = vmul.f32 0.010416667, %v2846_v38  ;;  %2892 = vadd.xlane.f32.xlu0 %v2883_v21 }
 0x5d8   : > { %v2868_v25 = vsub.f32 %v5144_v40, %v2860_v27 }
 0x5da   : > { %v5168_v41 = vmul.f32 %v4219_v29, %v2868_v25 }
 0x5dc   : > { %v2884_v10 = vmul.f32 %v5168_v41, %v5168_v41 }
 0x5dd   : > { %v2848_v20 = vpop.xlane.xlu0 %2847 }
 0x5de   : > { %v2861_v26 = vmul.f32 0.010416667, %v2848_v20  ;;  %2894 = vadd.xlane.f32.xlu2 %v2884_v10 }
 0x5e0   : > { %v2869_v14 = vsub.f32 %v2829_v46, %v2861_v26  ;;  %v4094_v46 = vld [vmem:[%s5295_s7 + $0x30] sm:$0xff] }
 0x5e1   : > { %3118 = vmatpush.bf16.msrb.mxu3 %v4094_v46 }
 0x5e2   : > { %v5172_v42 = vmul.f32 %v4219_v29, %v2869_v14  ;;  %v5220_v14 = vld [vmem:[%s5292_s4 + $0x2] ss:$0 sm:$0xff] }
 0x5e4   : > { %v2885_v44 = vmul.f32 %v5172_v42, %v5172_v42 }
 0x5e5   : > { %v2850_v0 = vpop.xlane.xlu2 %2849  ;;  %3119 = vmatpush.bf16.msrb.mxu3 %v4093_v5 }
 0x5e6   : > { %v2862_v40 = vmul.f32 0.010416667, %v2850_v0  ;;  %2896 = vadd.xlane.f32.xlu1 %v2885_v44 }
 0x5e8   : > { %v2870_v32 = vsub.f32 %v2832_v54, %v2862_v40 }
 0x5e9   : > { %3120 = vmatpush.bf16.msrb.mxu3 %v4092_v12 }
 0x5ea   : > { %v5179_v49 = vmul.f32 %v4219_v29, %v2870_v32 }
 0x5ec   : > { %v2886_v52 = vmul.f32 %v5179_v49, %v5179_v49 }
 0x5ed   : > { %v2852_v3 = vpop.xlane.xlu1 %2851  ;;  %3121 = vmatpush.bf16.msrb.mxu3 %v4091_v9 }
 0x5ee   : > { %v2863_v17 = vmul.f32 0.010416667, %v2852_v3  ;;  %2898 = vadd.xlane.f32.xlu0 %v2886_v52  ;;  %v5226_v3 = vld [vmem:[%s5293_s5 + $0x2] ss:$0 sm:$0xff] }
 0x5f0   : > { %v2871_v54 = vsub.f32 %v2834_v51, %v2863_v17 }
 0x5f1   : > { %3122 = vmatpush.bf16.msrb.mxu3 %v4090_v53 }
 0x5f2   : > { %v5189_v15 = vmul.f32 %v4219_v29, %v2871_v54 }
 0x5f4   : > { %v2887_v59 = vmul.f32 %v5189_v15, %v5189_v15 }
 0x5f5   : > { %v2854_v58 = vpop.xlane.xlu2 %2853  ;;  %3123 = vmatpush.bf16.msrb.mxu3 %v4089_v22 }
 0x5f6   : > { %v2864_v57 = vmul.f32 0.010416667, %v2854_v58  ;;  %2900 = vadd.xlane.f32.xlu2 %v2887_v59 }
 0x5f8   : > { %v2872_v6 = vsub.f32 %v2837_v4, %v2864_v57 }
 0x5fa   : > { %v5193_v62 = vmul.f32 %v4219_v29, %v2872_v6 }
 0x5fc   : > { %v2888_v63 = vmul.f32 %v5193_v62, %v5193_v62 }
 0x5fe   : > { %v2857_v39 = vpop.xlane.xlu0 %2856  ;;  %2902 = vadd.xlane.f32.xlu1 %v2888_v63 }
 0x5ff   : > { %v2865_v13 = vmul.f32 0.010416667, %v2857_v39 }
 0x601   : > { %v2873_v60 = vsub.f32 %v2839_v23, %v2865_v13  ;;  %v4088_v23 = vld [vmem:[%s5295_s7] sm:$0xff] }
 0x602   : > { %3124 = vmatpush.bf16.msrb.mxu3 %v4088_v23 }
 0x603   : > { %v5197_v51 = vmul.f32 %v4219_v29, %v2873_v60 }
 0x605   : > { %v2889_v8 = vmul.f32 %v5197_v51, %v5197_v51 }
 0x607   : > { %v2904_v61 = vsel %vm1068_vm4, %v2889_v8, 0.0 }
 0x608   : > { %2905 = vadd.xlane.f32.xlu0 %v2904_v61 }
 0x641   : > { %v2891_v18 = vpop.xlane.xlu1 %2890 }
 0x642   : > { %v2907_v4 = vmul.f32 0.010416667, %v2891_v18 }
 0x644   : > { %v2915_v19 = vadd.f32 0.0001, %v2907_v4 }
 0x646   : > { %4202 = vrsqrt.f32 %v2915_v19  ;;  %vm2929_vm1 = vweird.f32 %v2915_v19 }
 0x649   : > { %v2893_v34 = vpop.xlane.xlu0 %2892 }
 0x64a   : > { %v2908_v45 = vmul.f32 0.010416667, %v2893_v34 }
 0x64c   : > { %v4203_v24 = vpop.eup %4202  ;;  %v2916_v28 = vadd.f32 0.0001, %v2908_v45 }
 0x64d   : > { %v2924_v31 = vmul.f32 %v4203_v24, %v2915_v19  ;;  %vm2930_vm0 = vweird.f32 %v4203_v24 }
 0x64e   : > { %4204 = vrsqrt.f32 %v2916_v28  ;;  %vm2931_vm2 = vmor %vm2929_vm1, %vm2930_vm0  ;;  %vm2939_vm4 = vweird.f32 %v2916_v28 }
 0x64f   : > { %v2925_v30 = vmul.f32 %v4203_v24, %v2924_v31 }
 0x651   : > { %v2926_v7 = vmul.f32 0.5, %v2925_v30  ;;  %v2895_v35 = vpop.xlane.xlu2 %2894 }
 0x652   : > { %v2909_v36 = vmul.f32 0.010416667, %v2895_v35 }
 0x653   : > { %v2927_v37 = vsub.f32 1.5, %v2926_v7 }
 0x654   : > { %v4205_v21 = vpop.eup %4204  ;;  %v2917_v38 = vadd.f32 0.0001, %v2909_v36 }
 0x655   : > { %v2928_v27 = vmul.f32 %v4203_v24, %v2927_v37  ;;  %v2934_v25 = vmul.f32 %v4205_v21, %v2916_v28  ;;  %vm2940_vm3 = vweird.f32 %v4205_v21 }
 0x656   : > { %4206 = vrsqrt.f32 %v2917_v38  ;;  %vm2941_vm5 = vmor %vm2939_vm4, %vm2940_vm3  ;;  %vm2949_vm6 = vweird.f32 %v2917_v38 }
 0x657   : > { %v2932_v29 = vsel %vm2931_vm2, %v4203_v24, %v2928_v27  ;;  %v2935_v10 = vmul.f32 %v4205_v21, %v2934_v25 }
 0x658   : > { %v3003_v44 = vmul.f32 %v2932_v29, %v5154_v55 }
 0x659   : > { %v2936_v20 = vmul.f32 0.5, %v2935_v10  ;;  %v2897_v26 = vpop.xlane.xlu1 %2896 }
 0x65a   : > { %v2910_v0 = vmul.f32 0.010416667, %v2897_v26  ;;  %v3016_v17 = vmul.f32 %v5220_v14, %v3003_v44 }
 0x65b   : > { %v2937_v40 = vsub.f32 1.5, %v2936_v20 }
 0x65c   : > { %v4207_v32 = vpop.eup %4206  ;;  %v2918_v47 = vadd.f32 0.0001, %v2910_v0  ;;  %v3029_v57 = vadd.f32 %v5226_v3, %v3016_v17 }
 0x65d   : > { %v2938_v46 = vmul.f32 %v4205_v21, %v2937_v40  ;;  %v2944_v52 = vmul.f32 %v4207_v32, %v2917_v38  ;;  %vm2950_vm15 = vweird.f32 %v4207_v32 }
 0x65e   : > { %4208 = vrsqrt.f32 %v2918_v47  ;;  %vm2951_vm7 = vmor %vm2949_vm6, %vm2950_vm15  ;;  %v3037_v9 = vmax.f32 %v3029_v57, 0.0  ;;  %vm2959_vm9 = vweird.f32 %v2918_v47 }
 0x65f   : > { %v2942_v5 = vsel %vm2941_vm5, %v4205_v21, %v2938_v46  ;;  %v2945_v54 = vmul.f32 %v4207_v32, %v2944_v52 }
 0x660   : > { %v3004_v55 = vmul.f32 %v2942_v5, %v5160_v56 }
 0x661   : > { %v2946_v59 = vmul.f32 0.5, %v2945_v54  ;;  %v2899_v58 = vpop.xlane.xlu0 %2898 }
 0x662   : > { %v3017_v6 = vmul.f32 %v5220_v14, %v3004_v55  ;;  %v2911_v63 = vmul.f32 0.010416667, %v2899_v58 }
 0x663   : > { %v2947_v39 = vsub.f32 1.5, %v2946_v59 }
 0x664   : > { %v4209_v13 = vpop.eup %4208  ;;  %v3030_v60 = vadd.f32 %v5226_v3, %v3017_v6  ;;  %v2919_v8 = vadd.f32 0.0001, %v2911_v63 }
 0x665   : > { %v2948_v61 = vmul.f32 %v4207_v32, %v2947_v39  ;;  %v2954_v12 = vmul.f32 %v4209_v13, %v2918_v47  ;;  %vm2960_vm8 = vweird.f32 %v4209_v13 }
 0x666   : > { %4210 = vrsqrt.f32 %v2919_v8  ;;  %v3038_v56 = vmax.f32 %v3030_v60, 0.0  ;;  %vm2961_vm10 = vmor %vm2959_vm9, %vm2960_vm8  ;;  %vm2969_vm12 = vweird.f32 %v2919_v8 }
 0x667   : > { %v2952_v18 = vsel %vm2951_vm7, %v4207_v32, %v2948_v61  ;;  %v2955_v4 = vmul.f32 %v4209_v13, %v2954_v12 }
 0x668   : > { %v3045_v53 = vpack.c.bf16 %v3038_v56, %v3037_v9  ;;  %v3005_v34 = vmul.f32 %v2952_v18, %v5168_v41 }
 0x669   : > { %v2956_v19 = vmul.f32 0.5, %v2955_v4  ;;  %v2901_v22 = vpop.xlane.xlu2 %2900 }
 0x66a   : > { %v2912_v45 = vmul.f32 0.010416667, %v2901_v22  ;;  %3125 = vmatmul.bf16.vlgmr.msrb.gmra.mxu3 %v3045_v53  ;;  %v3018_v7 = vmul.f32 %v5220_v14, %v3005_v34 }
 0x66b   : > { %v2957_v23 = vsub.f32 1.5, %v2956_v19 }
 0x66c   : > { %v4211_v24 = vpop.eup %4210  ;;  %v2920_v28 = vadd.f32 0.0001, %v2912_v45  ;;  %v3031_v25 = vadd.f32 %v5226_v3, %v3018_v7 }
 0x66d   : > { %v2958_v31 = vmul.f32 %v4209_v13, %v2957_v23  ;;  %v2964_v30 = vmul.f32 %v4211_v24, %v2919_v8  ;;  %vm2970_vm11 = vweird.f32 %v4211_v24 }
 0x66e   : > { %4212 = vrsqrt.f32 %v2920_v28  ;;  %vm2971_vm13 = vmor %vm2969_vm12, %vm2970_vm11  ;;  %v3039_v40 = vmax.f32 %v3031_v25, 0.0  ;;  %vm2979_vm0 = vweird.f32 %v2920_v28 }
 0x66f   : > { %v2962_v35 = vsel %vm2961_vm10, %v4209_v13, %v2958_v31  ;;  %v2965_v36 = vmul.f32 %v4211_v24, %v2964_v30 }
 0x670   : > { %v3006_v37 = vmul.f32 %v2962_v35, %v5172_v42 }
 0x671   : > { %v2966_v21 = vmul.f32 0.5, %v2965_v36  ;;  %v2903_v38 = vpop.xlane.xlu1 %2902 }
 0x672   : > { %v2913_v41 = vmul.f32 0.010416667, %v2903_v38  ;;  %v3019_v27 = vmul.f32 %v5220_v14, %v3006_v37 }
 0x673   : > { %v2967_v29 = vsub.f32 1.5, %v2966_v21 }
 0x674   : > { %v4213_v10 = vpop.eup %4212  ;;  %v2921_v20 = vadd.f32 0.0001, %v2913_v41  ;;  %v3032_v26 = vadd.f32 %v5226_v3, %v3019_v27  ;;  %v3146_v41 = vld [vmem:[%s4374_s26 + $0x2] sm:$0xff] }
 0x675   : > { %v2968_v44 = vmul.f32 %v4211_v24, %v2967_v29  ;;  %v2974_v0 = vmul.f32 %v4213_v10, %v2920_v28  ;;  %vm2980_vm14 = vweird.f32 %v4213_v10 }
 0x676   : > { %4214 = vrsqrt.f32 %v2921_v20  ;;  %v3040_v42 = vmax.f32 %v3032_v26, 0.0  ;;  %vm2981_vm1 = vmor %vm2979_vm0, %vm2980_vm14  ;;  %vm2989_vm3 = vweird.f32 %v2921_v20 }
 0x677   : > { %v2972_v32 = vsel %vm2971_vm13, %v4211_v24, %v2968_v44  ;;  %v2975_v47 = vmul.f32 %v4213_v10, %v2974_v0 }
 0x678   : > { %v3046_v46 = vpack.c.bf16 %v3040_v42, %v3039_v40  ;;  %v3007_v17 = vmul.f32 %v2972_v32, %v5179_v49  ;;  %v3148_v42 = vld [vmem:[%s4374_s26 + $0x12] sm:$0xff] }
 0x679   : > { %v2976_v52 = vmul.f32 0.5, %v2975_v47 }
 0x67a   : > { %3130 = vmatmul.bf16.gmra.mxu3 %v3046_v46  ;;  %v3020_v63 = vmul.f32 %v5220_v14, %v3007_v17 }
 0x67b   : > { %v2977_v5 = vsub.f32 1.5, %v2976_v52  ;;  %v2906_v54 = vpop.xlane.xlu0 %2905  ;;  %v3149_v52 = vld [vmem:[%s4374_s26 + $0x1a] sm:$0xff] }
 0x67c   : > { %v4215_v55 = vpop.eup %4214  ;;  %v2914_v59 = vmul.f32 0.010416667, %v2906_v54  ;;  %v3033_v61 = vadd.f32 %v5226_v3, %v3020_v63 }
 0x67d   : > { %v2978_v58 = vmul.f32 %v4213_v10, %v2977_v5  ;;  %v2984_v57 = vmul.f32 %v4215_v55, %v2921_v20  ;;  %vm2990_vm2 = vweird.f32 %v4215_v55  ;;  %v3147_v20 = vld [vmem:[%s4374_s26 + $0xa] sm:$0xff] }
 0x67e   : > { %v2922_v6 = vadd.f32 0.0001, %v2914_v59  ;;  %v3041_v4 = vmax.f32 %v3033_v61, 0.0  ;;  %vm2991_vm4 = vmor %vm2989_vm3, %vm2990_vm2 }
 0x67f   : > { %v2982_v39 = vsel %vm2981_vm1, %v4213_v10, %v2978_v58  ;;  %v2985_v13 = vmul.f32 %v4215_v55, %v2984_v57 }
 0x680   : > { %v3008_v60 = vmul.f32 %v2982_v39, %v5189_v15  ;;  %4216 = vrsqrt.f32 %v2922_v6  ;;  %vm2999_vm15 = vweird.f32 %v2922_v6 }
 0x681   : > { %v2986_v8 = vmul.f32 0.5, %v2985_v13 }
 0x682   : > { %v3021_v49 = vmul.f32 %v5220_v14, %v3008_v60 }
 0x683   : > { %v2987_v12 = vsub.f32 1.5, %v2986_v8 }
 0x684   : > { %v3034_v9 = vadd.f32 %v5226_v3, %v3021_v49 }
 0x685   : > { %v2988_v56 = vmul.f32 %v4215_v55, %v2987_v12 }
 0x686   : > { %v4217_v18 = vpop.eup %4216  ;;  %v3042_v53 = vmax.f32 %v3034_v9, 0.0  ;;  %v3153_v9 = vld [vmem:[%s4374_s26 + $0x3a] sm:$0xf] }
 0x687   : > { %v2994_v19 = vmul.f32 %v4217_v18, %v2922_v6  ;;  %v2992_v34 = vsel %vm2991_vm4, %v4215_v55, %v2988_v56  ;;  %vm3000_vm5 = vweird.f32 %v4217_v18  ;;  %v3150_v55 = vld [vmem:[%s4374_s26 + $0x22] sm:$0xff]  ;;  %v3151_v6 = vld [vmem:[%s4374_s26 + $0x2a] sm:$0xff] }
 0x688   : > { %v3047_v22 = vpack.c.bf16 %v3042_v53, %v3041_v4  ;;  %v3009_v23 = vmul.f32 %v2992_v34, %v5193_v62  ;;  %vm3001_vm6 = vmor %vm2999_vm15, %vm3000_vm5 }
 0x689   : > { %v2995_v15 = vmul.f32 %v4217_v18, %v2994_v19 }
 0x68a   : > { %3135 = vmatmul.bf16.gmra.mxu3 %v3047_v22  ;;  %v3022_v31 = vmul.f32 %v5220_v14, %v3009_v23 }
 0x68b   : > { %v2996_v45 = vmul.f32 0.5, %v2995_v15 }
 0x68c   : > { %v3035_v36 = vadd.f32 %v5226_v3, %v3022_v31 }
 0x68d   : > { %v2997_v24 = vsub.f32 1.5, %v2996_v45 }
 0x68e   : > { %v3043_v62 = vmax.f32 %v3035_v36, 0.0 }
 0x68f   : > { %v2998_v28 = vmul.f32 %v4217_v18, %v2997_v24 }
 0x691   : > { %v3002_v30 = vsel %vm3001_vm6, %v4217_v18, %v2998_v28 }
 0x692   : > { %v3010_v7 = vmul.f32 %v3002_v30, %v5197_v51  ;;  %v4229_v51 = vmov 0.0  }
 0x693   : > { %3178 = vst [vmem:[%s5255_s13 + $0x3c] sm:$0xf] %v4229_v51 }
 0x694   : > { %v3023_v35 = vmul.f32 %v5220_v14, %v3010_v7  ;;  %v4169_v14 = vld [vmem:[%s5296_s8] ss:$0 sm:$0xff] }
 0x696   : > { %v3036_v37 = vadd.f32 %v5226_v3, %v3023_v35 }
 0x698   : > { %v3044_v21 = vmax.f32 %v3036_v37, 0.0 }
 0x69a   : > { %v3048_v38 = vpack.c.bf16 %v3044_v21, %v3043_v62 }
 0x69c   : > { %3140 = vmatmul.bf16.gmra.mxu3 %v3048_v38 }
 0x6ed   : > { %v3126_v3 = vpop.f32.mrf.mxu3 }
 0x6ee   : > { %v3127_v27 = vadd.f32 %v4169_v14, %v3126_v3 }
 0x6f0   : > { %v3154_v25 = vadd.f32 %v3146_v41, %v3127_v27 }
 0x6f2   : > { %v3162_v29 = vmul.f32 %v3154_v25, %v4600_v1 }
 0x6f4   : > { %3170 = vst [vmem:[%s5255_s13] sm:$0xff] %v3162_v29 }
 0x6f5   : > { %v3128_v10 = vpop.f32.mrf.mxu3 }
 0x6f6   : > { %v3129_v26 = vadd.f32 %v4169_v14, %v3128_v10 }
 0x6f8   : > { %v3155_v44 = vadd.f32 %v3147_v20, %v3129_v26 }
 0x6fa   : > { %v3163_v0 = vmul.f32 %v3155_v44, %v4606_v16 }
 0x6fc   : > { %3171 = vst [vmem:[%s5255_s13 + $0x8] sm:$0xff] %v3163_v0 }
 0x6fd   : > { %v3131_v40 = vpop.f32.mrf.mxu3 }
 0x6fe   : > { %v3132_v32 = vadd.f32 %v4169_v14, %v3131_v40 }
 0x700   : > { %v3156_v47 = vadd.f32 %v3148_v42, %v3132_v32 }
 0x702   : > { %v3164_v46 = vmul.f32 %v3156_v47, %v4618_v50 }
 0x704   : > { %3172 = vst [vmem:[%s5255_s13 + $0x10] sm:$0xff] %v3164_v46 }
 0x705   : > { %v3133_v1 = vpop.f32.mrf.mxu3 }
 0x706   : > { %v3134_v17 = vadd.f32 %v4169_v14, %v3133_v1 }
 0x708   : > { %v3157_v5 = vadd.f32 %v3149_v52, %v3134_v17 }
 0x70a   : > { %v3165_v54 = vmul.f32 %v3157_v5, %v4739_v2  ;;  %v3152_v2 = vld [vmem:[%s4374_s26 + $0x32] sm:$0xff] }
 0x70c   : > { %3173 = vst [vmem:[%s5255_s13 + $0x18] sm:$0xff] %v3165_v54 }
 0x70d   : > { %v3136_v16 = vpop.f32.mrf.mxu3 }
 0x70e   : > { %v3137_v59 = vadd.f32 %v4169_v14, %v3136_v16 }
 0x710   : > { %v3158_v58 = vadd.f32 %v3150_v55, %v3137_v59 }
 0x712   : > { %v3166_v57 = vmul.f32 %v3158_v58, %v4759_v33 }
 0x714   : > { %3174 = vst [vmem:[%s5255_s13 + $0x20] sm:$0xff] %v3166_v57 }
 0x715   : > { %v3138_v50 = vpop.f32.mrf.mxu3 }
 0x716   : > { %v3139_v63 = vadd.f32 %v4169_v14, %v3138_v50 }
 0x718   : > { %v3159_v39 = vadd.f32 %v3151_v6, %v3139_v63 }
 0x71a   : > { %v3167_v13 = vmul.f32 %v3159_v39, %v4749_v11 }
 0x71c   : > { %3175 = vst [vmem:[%s5255_s13 + $0x28] sm:$0xff] %v3167_v13 }
 0x71f   : > { %v3141_v60 = vpop.f32.mrf.mxu3 }
 0x720   : > { %v3142_v8 = vadd.f32 %v4169_v14, %v3141_v60 }
 0x722   : > { %v3160_v49 = vadd.f32 %v3152_v2, %v3142_v8 }
 0x724   : > { %v3168_v61 = vmul.f32 %v3160_v49, %v4777_v48 }
 0x726   : > { %3176 = vst [vmem:[%s5255_s13 + $0x30] sm:$0xff] %v3168_v61 }
 0x727   : > { %v3143_v12 = vpop.f32.mrf.mxu3 }
 0x728   : > { %v3144_v56 = vadd.f32 %v4169_v14, %v3143_v12 }
 0x72a   : > { %v3161_v33 = vadd.f32 %v3153_v9, %v3144_v56 }
 0x72c   : > { %v3169_v18 = vmul.f32 %v3161_v33, %v4770_v43 }
 0x72e   : > { %3177 = vst [vmem:[%s5255_s13 + $0x38] sm:$0xf] %v3169_v18 }
 0x72f PF: > { %s19_s30 = sadd.s32 1, %s4226_s30  }
 0x730   : > { %p16_p4 = scmp.ge.s32.totalorder %s19_s30, 4  }
 0x732   :  { %18 = sbr.rel (!%p16_p4) target bundleno = 1 (0x1), region = 97 }

</bundles_post_ra>
